<compile_context>
chip_gen: v6e
topology: v6e:2x2x1
jax: 0.10.0
libtpu: 0.0.40
codegen_flags: <defaults>
</compile_context>

<pallas_src>
import functools
import math

import jax
import jax.numpy as jnp
import numpy as np
from jax.experimental import pallas as pl
from jax.experimental.pallas import tpu as pltpu


def _round_up(x, m):
    return ((x + m - 1) // m) * m


# ----------------------------------------------------------------------------
# Fused kernel: x_tile -> [GEMM + bias (+ LeakyReLU)] * L, everything in VMEM.
# ----------------------------------------------------------------------------
def _fused_mlp_kernel(x_ref, *refs, slope, acts):
    """refs = (w1, b1, w2, b2, ..., wL, bL, out_ref).

    acts[i] == True  -> LeakyReLU(slope) after layer i.
    MXU operands are cast to the weight dtype (bf16); bias add and the
    activation run in f32 on the VPU (v5e-safe).
    """
    out_ref = refs[-1]
    a = x_ref[...]                                        # (TILE_M, K0) bf16
    for i, apply_act in enumerate(acts):
        w_ref = refs[2 * i]
        b_ref = refs[2 * i + 1]
        y = jnp.dot(a.astype(w_ref.dtype), w_ref[...],
                    preferred_element_type=jnp.float32)   # MXU, f32 accumulate
        y = y + b_ref[...]                                # (TILE_M, N) + (1, N)
        if apply_act:
            y = jnp.maximum(y, slope * y)                 # LeakyReLU, one vmax
        a = y
    out_ref[...] = a.astype(out_ref.dtype)


def fused_forward(x_flat, mats, biases, *, out_dim, slope=0.1, tile_m=256):
    """x_flat: (B, K0); mats[i]: (K_i, N_i) bf16; biases[i]: (1, N_i) f32."""
    B, K0 = x_flat.shape
    assert len(mats) == len(biases)
    acts = tuple([True] * (len(mats) - 1) + [False])      # no act after fc2

    # M tiling: tile is a multiple of 8, no bigger than the (padded) batch.
    tile_m = max(8, min(tile_m, _round_up(B, 8)))
    b_pad = _round_up(B, tile_m)
    x_in = x_flat.astype(jnp.bfloat16)                    # bf16 HBM stream
    if b_pad != B:
        x_in = jnp.pad(x_in, ((0, b_pad - B), (0, 0)))
    grid = (b_pad // tile_m,)

    operands = [x_in]
    in_specs = [pl.BlockSpec((tile_m, K0), lambda i: (i, 0))]
    for m, b in zip(mats, biases):
        operands += [m, b]
        # Constant index_map -> weights/biases stay VMEM-resident across steps.
        in_specs += [pl.BlockSpec(m.shape, lambda i: (0, 0)),
                     pl.BlockSpec(b.shape, lambda i: (0, 0))]
    out_specs = pl.BlockSpec((tile_m, out_dim), lambda i: (i, 0))

    flops = 2 * b_pad * sum(int(m.shape[0]) * int(m.shape[1]) for m in mats)
    bytes_accessed = (sum(int(np.prod(o.shape)) * o.dtype.itemsize for o in operands)
                      + b_pad * out_dim * 4)

    # Only raise the scoped-VMEM cap for very large tiles (v5e default: 16 MiB).
    vmem_limit = 64 * 1024 * 1024 if tile_m >= 1024 else None

    out = pl.pallas_call(
        functools.partial(_fused_mlp_kernel, slope=slope, acts=acts),
        out_shape=jax.ShapeDtypeStruct((b_pad, out_dim), jnp.float32),
        grid=grid,
        in_specs=in_specs,
        out_specs=out_specs,
        compiler_params=pltpu.CompilerParams(
            dimension_semantics=("parallel",),
            vmem_limit_bytes=vmem_limit),
        cost_estimate=pl.CostEstimate(flops=flops, transcendentals=0,
                                      bytes_accessed=bytes_accessed),
    )(*operands)
    return out[:B] if b_pad != B else out


# ----------------------------------------------------------------------------
# Init-time weight transforms (pure numpy, done once).
# ----------------------------------------------------------------------------
def _conv_toeplitz(w, H, W, stride, input_order):
    """Expand a conv filter into a dense GEMM matrix.

    w: (Cout, Cin, k, k).  Returns M of shape (H*W*Cin, Ho*Wo*Cout) such that
    flatten(out, NHWC) = flatten(in, input_order) @ M  reproduces PyTorch's
    Conv2d with padding=(k-1)//2 ('same' for odd k) and the given stride.
    Zero padding is folded in by dropping out-of-bounds taps.
    """
    Cout, Cin, k, _ = w.shape
    pad = (k - 1) // 2                      # matches spec for odd k (7, 5, 5)
    Ho = (H + 2 * pad - k) // stride + 1
    Wo = (W + 2 * pad - k) // stride + 1
    wt = np.transpose(np.asarray(w, np.float32), (2, 3, 1, 0))   # (k,k,Cin,Cout)
    M = np.zeros((H * W * Cin, Ho * Wo * Cout), np.float32)
    ci = np.arange(Cin)
    for ho in range(Ho):
        for wo in range(Wo):
            col = (ho * Wo + wo) * Cout     # NHWC-flat output column block
            for kh in range(k):
                h = ho * stride - pad + kh
                if h < 0 or h >= H:
                    continue
                for kw in range(k):
                    ww = wo * stride - pad + kw
                    if ww < 0 or ww >= W:
                        continue
                    if input_order == "nchw":
                        rows = (ci * H + h) * W + ww
                    else:                    # "nhwc"
                        rows = (h * W + ww) * Cin + ci
                    M[rows, col:col + Cout] = wt[kh, kw]
    return M, Ho, Wo


def build_fused_params(p, input_shape, *, mxu_dtype=jnp.bfloat16):
    """Turn PyTorch-layout params into the 5 GEMM (weight, bias) pairs."""
    C, H, W = input_shape
    mats, biases = [], []

    h, w_sp, cin = H, W, C
    order = "nchw"                           # raw image is NCHW-flattened
    for wname, bname in (("w1", "b1"), ("w2", "b2"), ("w3", "b3")):
        wt = np.asarray(p[wname], np.float32)
        bias = np.asarray(p[bname], np.float32)
        M, ho, wo = _conv_toeplitz(wt, h, w_sp, stride=2, input_order=order)
        mats.append(jnp.asarray(M, mxu_dtype))
        biases.append(jnp.asarray(np.tile(bias, ho * wo)[None, :], jnp.float32))
        h, w_sp, cin = ho, wo, wt.shape[0]
        order = "nhwc"                       # intermediates stay NHWC-flat

    # fc1: fold PyTorch's NCHW flatten order into a row permutation.
    perm = np.arange(cin * h * w_sp).reshape(cin, h, w_sp).transpose(1, 2, 0).reshape(-1)
    w4 = np.asarray(p["fc1_w"], np.float32).T[perm]          # (cnn_out_dim, 2*out_dim)
    mats.append(jnp.asarray(w4, mxu_dtype))
    biases.append(jnp.asarray(np.asarray(p["fc1_b"], np.float32)[None, :], jnp.float32))

    w5 = np.asarray(p["fc2_w"], np.float32).T                 # (2*out_dim, out_dim)
    mats.append(jnp.asarray(w5, mxu_dtype))
    biases.append(jnp.asarray(np.asarray(p["fc2_b"], np.float32)[None, :], jnp.float32))
    return mats, biases


def image_encoder_forward(fused_params, image, *, slope=0.1, tile_m=256):
    """image: (B, C, H, W) f32 -> (B, out_dim) f32, via one Pallas kernel."""
    mats, biases = fused_params
    B = image.shape[0]
    out_dim = mats[-1].shape[1]
    x_flat = image.reshape(B, -1)            # contiguous NCHW flatten (free)
    return fused_forward(x_flat, mats, biases, out_dim=out_dim, slope=slope,
                         tile_m=tile_m)


# ----------------------------------------------------------------------------
# Parameter init (PyTorch default-equivalent: U(-1/sqrt(fan_in), 1/sqrt(fan_in)))
# ----------------------------------------------------------------------------
def _uniform(key, shape, fan_in):
    bound = 1.0 / math.sqrt(fan_in)
    return jax.random.uniform(key, shape, jnp.float32, -bound, bound)


def init_image_encoder(key, input_shape, out_dim):
    C, H, W = input_shape
    assert C <= 4

    def samestride2(h):                      # 'same' conv with stride 2
        return (h - 1) // 2 + 1

    Ho, Wo = H, W
    for _ in range(3):
        Ho, Wo = samestride2(Ho), samestride2(Wo)
    cnn_out_dim = 32 * Ho * Wo

    ks = jax.random.split(key, 10)
    return {
        "w1": _uniform(ks[0], (8, C, 7, 7), C * 49),
        "b1": _uniform(ks[1], (8,), C * 49),
        "w2": _uniform(ks[2], (16, 8, 5, 5), 8 * 25),
        "b2": _uniform(ks[3], (16,), 8 * 25),
        "w3": _uniform(ks[4], (32, 16, 5, 5), 16 * 25),
        "b3": _uniform(ks[5], (32,), 16 * 25),
        "fc1_w": _uniform(ks[6], (out_dim * 2, cnn_out_dim), cnn_out_dim),
        "fc1_b": _uniform(ks[7], (out_dim * 2,), cnn_out_dim),
        "fc2_w": _uniform(ks[8], (out_dim, out_dim * 2), out_dim * 2),
        "fc2_b": _uniform(ks[9], (out_dim,), out_dim * 2),
    }


# ----------------------------------------------------------------------------
# Pure-JAX f32 reference (direct convs, HIGHEST precision) for validation.
# ----------------------------------------------------------------------------
def reference_forward(p, image, *, slope=0.1):
    hi = jax.lax.Precision.HIGHEST

    def conv_lrelu(x, w, b, stride):
        k = w.shape[-1]
        pad = (k - 1) // 2
        y = jax.lax.conv_general_dilated(
            x, w, window_strides=(stride, stride),
            padding=[(pad, pad), (pad, pad)],
            dimension_numbers=("NCHW", "OIHW", "NCHW"), precision=hi)
        y = y + b[None, :, None, None]
        return jnp.where(y >= 0.0, y, slope * y)

    x = conv_lrelu(image, p["w1"], p["b1"], 2)
    x = conv_lrelu(x, p["w2"], p["b2"], 2)
    x = conv_lrelu(x, p["w3"], p["b3"], 2)
    x = x.reshape(x.shape[0], -1)                       # NCHW flatten
    x = jnp.matmul(x, p["fc1_w"].T, precision=hi) + p["fc1_b"][None, :]
    x = jnp.where(x >= 0.0, x, slope * x)
    x = jnp.matmul(x, p["fc2_w"].T, precision=hi) + p["fc2_b"][None, :]
    return x


if __name__ == "__main__":
    key = jax.random.PRNGKey(0)
    k_img, k_params, k_big = jax.random.split(key, 3)

    input_shape = (4, 16, 16)    # (C, H, W), C <= 4
    out_dim = 32
    batch = 2

    params = init_image_encoder(k_params, input_shape, out_dim)
    fused = build_fused_params(params, input_shape)     # one-time weight transform
    fwd = jax.jit(functools.partial(image_encoder_forward, tile_m=256))

    # --- small-batch run (the required example) ---
    image = jax.random.normal(k_img, (batch,) + input_shape, jnp.float32)
    out = jax.block_until_ready(fwd(fused, image))
    assert out.shape == (batch, out_dim), out.shape

    ref = jax.block_until_ready(reference_forward(params, image))
    max_diff = float(np.max(np.abs(np.asarray(out) - np.asarray(ref))))
    assert max_diff < 5e-2, max_diff

    # --- multi-tile / padded-remainder run (exercises the batch grid axis) ---
    big_batch = 260                                     # -> padded to 2 x TILE_M
    image_big = jax.random.normal(k_big, (big_batch,) + input_shape, jnp.float32)
    out_big = jax.block_until_ready(fwd(fused, image_big))
    assert out_big.shape == (big_batch, out_dim), out_big.shape
    ref_big = jax.block_until_ready(reference_forward(params, image_big))
    max_diff_big = float(np.max(np.abs(np.asarray(out_big) - np.asarray(ref_big))))
    assert max_diff_big < 5e-2, max_diff_big

    print("KERNEL_OK")
</pallas_src>

<mosaic_0001>
module attributes {stable_mosaic.version = 11 : i64} {
  func.func @_fused_mlp_kernel(%arg0: i32, %arg1: memref<8x1024xbf16, #tpu.memory_space<vmem>>, %arg2: memref<1024x512xbf16, #tpu.memory_space<vmem>>, %arg3: memref<1x512xf32, #tpu.memory_space<vmem>>, %arg4: memref<512x256xbf16, #tpu.memory_space<vmem>>, %arg5: memref<1x256xf32, #tpu.memory_space<vmem>>, %arg6: memref<256x128xbf16, #tpu.memory_space<vmem>>, %arg7: memref<1x128xf32, #tpu.memory_space<vmem>>, %arg8: memref<128x64xbf16, #tpu.memory_space<vmem>>, %arg9: memref<1x64xf32, #tpu.memory_space<vmem>>, %arg10: memref<64x32xbf16, #tpu.memory_space<vmem>>, %arg11: memref<1x32xf32, #tpu.memory_space<vmem>>, %arg12: memref<8x32xf32, #tpu.memory_space<vmem>>) attributes {dimension_semantics = [#tpu.dimension_semantics<parallel>], iteration_bounds = array<i64: 1>, scalar_prefetch = 0 : i64, scratch_operands = 0 : i64, tpu.core_type = #tpu.core_type<tc>, window_params = [{transform_indices = @transform_0, window_bounds = array<i64: 8, 1024>}, {pipeline_mode = #tpu.pipeline_mode<synchronous>, transform_indices = @transform_1, window_bounds = array<i64: 1024, 512>}, {pipeline_mode = #tpu.pipeline_mode<synchronous>, transform_indices = @transform_2, window_bounds = array<i64: 1, 512>}, {pipeline_mode = #tpu.pipeline_mode<synchronous>, transform_indices = @transform_3, window_bounds = array<i64: 512, 256>}, {pipeline_mode = #tpu.pipeline_mode<synchronous>, transform_indices = @transform_4, window_bounds = array<i64: 1, 256>}, {pipeline_mode = #tpu.pipeline_mode<synchronous>, transform_indices = @transform_5, window_bounds = array<i64: 256, 128>}, {pipeline_mode = #tpu.pipeline_mode<synchronous>, transform_indices = @transform_6, window_bounds = array<i64: 1, 128>}, {pipeline_mode = #tpu.pipeline_mode<synchronous>, transform_indices = @transform_7, window_bounds = array<i64: 128, 64>}, {pipeline_mode = #tpu.pipeline_mode<synchronous>, transform_indices = @transform_8, window_bounds = array<i64: 1, 64>}, {pipeline_mode = #tpu.pipeline_mode<synchronous>, transform_indices = @transform_9, window_bounds = array<i64: 64, 32>}, {pipeline_mode = #tpu.pipeline_mode<synchronous>, transform_indices = @transform_10, window_bounds = array<i64: 1, 32>}, {transform_indices = @transform_11, window_bounds = array<i64: 8, 32>}]} {
    %c0 = arith.constant 0 : index
    %c0_0 = arith.constant 0 : index
    %0 = vector.load %arg1[%c0, %c0_0] : memref<8x1024xbf16, #tpu.memory_space<vmem>>, vector<8x1024xbf16>
    %c0_1 = arith.constant 0 : index
    %c0_2 = arith.constant 0 : index
    %1 = vector.load %arg2[%c0_1, %c0_2] : memref<1024x512xbf16, #tpu.memory_space<vmem>>, vector<1024x512xbf16>
    %cst = arith.constant dense<0.000000e+00> : vector<8x512xf32>
    %2 = tpu.matmul %0, %1, %cst {dimension_numbers = #tpu.dot_dimension_numbers<[1], [0], [0], [1], [0, 0, 1, 1], [], []>} : vector<8x1024xbf16>, vector<1024x512xbf16>, vector<8x512xf32> -> vector<8x512xf32>
    %c0_3 = arith.constant 0 : index
    %c0_4 = arith.constant 0 : index
    %3 = vector.load %arg3[%c0_3, %c0_4] : memref<1x512xf32, #tpu.memory_space<vmem>>, vector<1x512xf32>
    %4 = vector.broadcast %3 : vector<1x512xf32> to vector<8x512xf32>
    %5 = arith.addf %2, %4 : vector<8x512xf32>
    %cst_5 = arith.constant 1.000000e-01 : f32
    %6 = vector.broadcast %cst_5 : f32 to vector<8x512xf32>
    %7 = arith.mulf %6, %5 : vector<8x512xf32>
    %8 = arith.maximumf %5, %7 : vector<8x512xf32>
    %9 = arith.truncf %8 : vector<8x512xf32> to vector<8x512xbf16>
    %c0_6 = arith.constant 0 : index
    %c0_7 = arith.constant 0 : index
    %10 = vector.load %arg4[%c0_6, %c0_7] : memref<512x256xbf16, #tpu.memory_space<vmem>>, vector<512x256xbf16>
    %cst_8 = arith.constant dense<0.000000e+00> : vector<8x256xf32>
    %11 = tpu.matmul %9, %10, %cst_8 {dimension_numbers = #tpu.dot_dimension_numbers<[1], [0], [0], [1], [0, 0, 1, 1], [], []>} : vector<8x512xbf16>, vector<512x256xbf16>, vector<8x256xf32> -> vector<8x256xf32>
    %c0_9 = arith.constant 0 : index
    %c0_10 = arith.constant 0 : index
    %12 = vector.load %arg5[%c0_9, %c0_10] : memref<1x256xf32, #tpu.memory_space<vmem>>, vector<1x256xf32>
    %13 = vector.broadcast %12 : vector<1x256xf32> to vector<8x256xf32>
    %14 = arith.addf %11, %13 : vector<8x256xf32>
    %cst_11 = arith.constant 1.000000e-01 : f32
    %15 = vector.broadcast %cst_11 : f32 to vector<8x256xf32>
    %16 = arith.mulf %15, %14 : vector<8x256xf32>
    %17 = arith.maximumf %14, %16 : vector<8x256xf32>
    %18 = arith.truncf %17 : vector<8x256xf32> to vector<8x256xbf16>
    %c0_12 = arith.constant 0 : index
    %c0_13 = arith.constant 0 : index
    %19 = vector.load %arg6[%c0_12, %c0_13] : memref<256x128xbf16, #tpu.memory_space<vmem>>, vector<256x128xbf16>
    %cst_14 = arith.constant dense<0.000000e+00> : vector<8x128xf32>
    %20 = tpu.matmul %18, %19, %cst_14 {dimension_numbers = #tpu.dot_dimension_numbers<[1], [0], [0], [1], [0, 0, 1, 1], [], []>} : vector<8x256xbf16>, vector<256x128xbf16>, vector<8x128xf32> -> vector<8x128xf32>
    %c0_15 = arith.constant 0 : index
    %c0_16 = arith.constant 0 : index
    %21 = vector.load %arg7[%c0_15, %c0_16] : memref<1x128xf32, #tpu.memory_space<vmem>>, vector<1x128xf32>
    %22 = vector.broadcast %21 : vector<1x128xf32> to vector<8x128xf32>
    %23 = arith.addf %20, %22 : vector<8x128xf32>
    %cst_17 = arith.constant 1.000000e-01 : f32
    %24 = vector.broadcast %cst_17 : f32 to vector<8x128xf32>
    %25 = arith.mulf %24, %23 : vector<8x128xf32>
    %26 = arith.maximumf %23, %25 : vector<8x128xf32>
    %27 = arith.truncf %26 : vector<8x128xf32> to vector<8x128xbf16>
    %c0_18 = arith.constant 0 : index
    %c0_19 = arith.constant 0 : index
    %28 = vector.load %arg8[%c0_18, %c0_19] : memref<128x64xbf16, #tpu.memory_space<vmem>>, vector<128x64xbf16>
    %cst_20 = arith.constant dense<0.000000e+00> : vector<8x64xf32>
    %29 = tpu.matmul %27, %28, %cst_20 {dimension_numbers = #tpu.dot_dimension_numbers<[1], [0], [0], [1], [0, 0, 1, 1], [], []>} : vector<8x128xbf16>, vector<128x64xbf16>, vector<8x64xf32> -> vector<8x64xf32>
    %c0_21 = arith.constant 0 : index
    %c0_22 = arith.constant 0 : index
    %30 = vector.load %arg9[%c0_21, %c0_22] : memref<1x64xf32, #tpu.memory_space<vmem>>, vector<1x64xf32>
    %31 = vector.broadcast %30 : vector<1x64xf32> to vector<8x64xf32>
    %32 = arith.addf %29, %31 : vector<8x64xf32>
    %cst_23 = arith.constant 1.000000e-01 : f32
    %33 = vector.broadcast %cst_23 : f32 to vector<8x64xf32>
    %34 = arith.mulf %33, %32 : vector<8x64xf32>
    %35 = arith.maximumf %32, %34 : vector<8x64xf32>
    %36 = arith.truncf %35 : vector<8x64xf32> to vector<8x64xbf16>
    %c0_24 = arith.constant 0 : index
    %c0_25 = arith.constant 0 : index
    %37 = vector.load %arg10[%c0_24, %c0_25] : memref<64x32xbf16, #tpu.memory_space<vmem>>, vector<64x32xbf16>
    %cst_26 = arith.constant dense<0.000000e+00> : vector<8x32xf32>
    %38 = tpu.matmul %36, %37, %cst_26 {dimension_numbers = #tpu.dot_dimension_numbers<[1], [0], [0], [1], [0, 0, 1, 1], [], []>} : vector<8x64xbf16>, vector<64x32xbf16>, vector<8x32xf32> -> vector<8x32xf32>
    %c0_27 = arith.constant 0 : index
    %c0_28 = arith.constant 0 : index
    %39 = vector.load %arg11[%c0_27, %c0_28] : memref<1x32xf32, #tpu.memory_space<vmem>>, vector<1x32xf32>
    %40 = vector.broadcast %39 : vector<1x32xf32> to vector<8x32xf32>
    %41 = arith.addf %38, %40 : vector<8x32xf32>
    %c0_29 = arith.constant 0 : index
    %c0_30 = arith.constant 0 : index
    %42 = vector.load %arg12[%c0_29, %c0_30] : memref<8x32xf32, #tpu.memory_space<vmem>>, vector<8x32xf32>
    tpu.vector_store %arg12[%c0_29, %c0_30], %41 {strides = array<i32>} : memref<8x32xf32, #tpu.memory_space<vmem>>, vector<8x32xf32>,
    return
  }
  func.func @transform_0(%arg0: i32) -> (i32, i32) {
    %c0_i32 = arith.constant 0 : i32
    %c0_i32_0 = arith.constant 0 : i32
    return %arg0, %c0_i32 : i32, i32
  }
  func.func @transform_1(%arg0: i32) -> (i32, i32) {
    %c0_i32 = arith.constant 0 : i32
    %c0_i32_0 = arith.constant 0 : i32
    %c0_i32_1 = arith.constant 0 : i32
    return %c0_i32, %c0_i32_0 : i32, i32
  }
  func.func @transform_2(%arg0: i32) -> (i32, i32) {
    %c0_i32 = arith.constant 0 : i32
    %c0_i32_0 = arith.constant 0 : i32
    %c0_i32_1 = arith.constant 0 : i32
    return %c0_i32, %c0_i32_0 : i32, i32
  }
  func.func @transform_3(%arg0: i32) -> (i32, i32) {
    %c0_i32 = arith.constant 0 : i32
    %c0_i32_0 = arith.constant 0 : i32
    %c0_i32_1 = arith.constant 0 : i32
    return %c0_i32, %c0_i32_0 : i32, i32
  }
  func.func @transform_4(%arg0: i32) -> (i32, i32) {
    %c0_i32 = arith.constant 0 : i32
    %c0_i32_0 = arith.constant 0 : i32
    %c0_i32_1 = arith.constant 0 : i32
    return %c0_i32, %c0_i32_0 : i32, i32
  }
  func.func @transform_5(%arg0: i32) -> (i32, i32) {
    %c0_i32 = arith.constant 0 : i32
    %c0_i32_0 = arith.constant 0 : i32
    %c0_i32_1 = arith.constant 0 : i32
    return %c0_i32, %c0_i32_0 : i32, i32
  }
  func.func @transform_6(%arg0: i32) -> (i32, i32) {
    %c0_i32 = arith.constant 0 : i32
    %c0_i32_0 = arith.constant 0 : i32
    %c0_i32_1 = arith.constant 0 : i32
    return %c0_i32, %c0_i32_0 : i32, i32
  }
  func.func @transform_7(%arg0: i32) -> (i32, i32) {
    %c0_i32 = arith.constant 0 : i32
    %c0_i32_0 = arith.constant 0 : i32
    %c0_i32_1 = arith.constant 0 : i32
    return %c0_i32, %c0_i32_0 : i32, i32
  }
  func.func @transform_8(%arg0: i32) -> (i32, i32) {
    %c0_i32 = arith.constant 0 : i32
    %c0_i32_0 = arith.constant 0 : i32
    %c0_i32_1 = arith.constant 0 : i32
    return %c0_i32, %c0_i32_0 : i32, i32
  }
  func.func @transform_9(%arg0: i32) -> (i32, i32) {
    %c0_i32 = arith.constant 0 : i32
    %c0_i32_0 = arith.constant 0 : i32
    %c0_i32_1 = arith.constant 0 : i32
    return %c0_i32, %c0_i32_0 : i32, i32
  }
  func.func @transform_10(%arg0: i32) -> (i32, i32) {
    %c0_i32 = arith.constant 0 : i32
    %c0_i32_0 = arith.constant 0 : i32
    %c0_i32_1 = arith.constant 0 : i32
    return %c0_i32, %c0_i32_0 : i32, i32
  }
  func.func @transform_11(%arg0: i32) -> (i32, i32) {
    %c0_i32 = arith.constant 0 : i32
    %c0_i32_0 = arith.constant 0 : i32
    return %arg0, %c0_i32 : i32, i32
  }
}

</mosaic_0001>

<bundles_post_ra>
// kernel: image_encoder_forward.1
= control target key start
LH: loop header
LB: loop body
LE: loop exit
PB: predicated region body
PF: predicated region fallthrough
CT: control target
= control target key end

     0   :  { %16 = vsyncpa [#allocation3], 0  ;;  %s4138_s0 = inlined_call_operand.vmem [shape: bf16[8,1024], index: 0, kind: input, shape index: {}]   ;;  %s4139_s1 = inlined_call_operand.hbm [shape: bf16[1024,512], index: 1, kind: input, shape index: {}]   ;;  %s4140_s2 = inlined_call_operand.vmem [shape: f32[1,512], index: 2, kind: input, shape index: {}]   ;;  %s4141_s3 = inlined_call_operand.hbm [shape: bf16[512,256], index: 3, kind: input, shape index: {}]   ;;  %s4142_s4 = inlined_call_operand.vmem [shape: f32[1,256], index: 4, kind: input, shape index: {}]   ;;  %s4143_s5 = inlined_call_operand.vmem [shape: bf16[256,128], index: 5, kind: input, shape index: {}]   ;;  %s4144_s6 = inlined_call_operand.vmem [shape: f32[1,128], index: 6, kind: input, shape index: {}]   ;;  %s4145_s7 = inlined_call_operand.vmem [shape: bf16[128,64], index: 7, kind: input, shape index: {}]   ;;  %s4146_s8 = inlined_call_operand.vmem [shape: f32[1,64], index: 8, kind: input, shape index: {}]   ;;  %s4147_s9 = inlined_call_operand.vmem [shape: bf16[64,32], index: 9, kind: input, shape index: {}]   ;;  %s4148_s10 = inlined_call_operand.vmem [shape: f32[1,32], index: 10, kind: input, shape index: {}]   ;;  %s4149_s11 = inlined_call_operand.vmem [shape: f32[8,32], index: 11, kind: output, shape index: {}]  }
   0x1   :  { %17 = vsyncpa [#allocation5], 0  ;;  %s3860_s17 = smov [#allocation2]  }
   0x2   :  { %s25_s18 = sshll.u32 %s3860_s17, 4  ;;  %s26_s18 = int_to_ptr.vmem [resolvable:$true] %s25_s18 }
   0x3   :  { %s3824_s19 = scalar_lea.vmem %s26_s18, 32768  ;;  %p3829_p1 = scmp.lt.s32.totalorder %s26_s18, %s26_s18 }
   0x4   :  { %p3825_p0 = scmp.ne.s32.totalorder %s26_s18, %s3824_s19  ;;  %p3830_p2 = scmp.lt.s32.totalorder %s3824_s19, %s3824_s19 }
   0x6   :  { %p3831_p3 = por %p3830_p2, %p3829_p1 }
   0x8   :  { %p3832_p4 = pnand %p3831_p3, %p3825_p0 }
   0xa   :  { %3835 = shalt.err (!%p3832_p4)
}
   0xb   :  { %s3861_s20 = smov 256   ;;  %s3862_s21 = smov 16  }
   0xc   :  { %31 = dma.hbm_to_vmem [thread:$0]  %s4139_s1, 32768, %s26_s18, [#allocation3], %s3861_s20, %s3861_s20, %s3862_s21  }
   0xd   :  { %s3863_s24 = smov [#allocation4]  }
   0xe   :  { %s39_s25 = sshll.u32 %s3863_s24, 4  ;;  %s40_s25 = int_to_ptr.vmem [resolvable:$true] %s39_s25 }
   0xf   :  { %s3844_s26 = scalar_lea.vmem %s40_s25, 8192  ;;  %p3849_p6 = scmp.lt.s32.totalorder %s40_s25, %s40_s25 }
  0x10   :  { %p3845_p5 = scmp.ne.s32.totalorder %s40_s25, %s3844_s26  ;;  %p3850_p7 = scmp.lt.s32.totalorder %s3844_s26, %s3844_s26 }
  0x12   :  { %p3851_p8 = por %p3850_p7, %p3849_p6 }
  0x14   :  { %p3852_p9 = pnand %p3851_p8, %p3845_p5 }
  0x16   :  { %3855 = shalt.err (!%p3852_p9)
}
  0x17   :  { %s3864_s27 = smov 128   ;;  %s3865_s28 = smov 8  }
  0x18   :  { %45 = dma.hbm_to_vmem [thread:$0]  %s4141_s3, 8192, %s40_s25, [#allocation5], %s3864_s27, %s3864_s27, %s3865_s28  }
  0x19   :  { %3856 = dma.done.wait [#allocation3], 32768  }
  0x1a   :  { %3857 = vsyncadd [#allocation3], 4294934528 }
  0x1b   :  { %3858 = dma.done.wait [#allocation5], 8192  }
  0x1c   :  { %3859 = vsyncadd [#allocation5], 4294959104  ;;  %v3300_v0 = vld [vmem:[#allocation2 + $0xe4] ss:$16 sps:$4 sm:$0xff]   ;;  %v3304_v2 = vld [vmem:[#allocation2 + $0xe0] ss:$16 sps:$4 sm:$0xff]  }
  0x1d   :  { %v3302_v1 = vld [vmem:[#allocation2 + $0x2e4] ss:$16 sps:$4 sm:$0xff]   ;;  %1657 = vmatprep.subr.bf16.mxu0 %v3300_v0  ;;  %v3305_v3 = vld [vmem:[#allocation2 + $0x2e0] ss:$16 sps:$4 sm:$0xff]   ;;  %v68_v48 = vld [vmem:[%s4138_s0 + $0x8] sm:$0xff]  ;;  %vm3867_vm0 = vmmov 0  }
  0x1e   :  { %1698 = vmatprep.subr.bf16.mxu1 %v3302_v1  ;;  %v3306_v4 = vld [vmem:[#allocation2 + $0xc4] ss:$16 sps:$4 sm:$0xff]   ;;  %1658 = vmatpush1.bf16.msra.mxu0 %v3304_v2  ;;  %v3310_v6 = vld [vmem:[#allocation2 + $0xc0] ss:$16 sps:$4 sm:$0xff]   ;;  %v3942_v51 = vcombine.high %v68_v48, %v68_v48  ;;  %vm2812_vm1 = vcmask 523264   ;;  %vm2856_vm2 = vcmask 261120  }
  0x1f   :  { %1699 = vmatpush1.bf16.msra.mxu1 %v3305_v3  ;;  %v3308_v5 = vld [vmem:[#allocation2 + $0x2c4] ss:$16 sps:$4 sm:$0xff]   ;;  %1659 = vmatprep.subr.bf16.mxu0 %v3306_v4  ;;  %v3311_v7 = vld [vmem:[#allocation2 + $0x2c0] ss:$16 sps:$4 sm:$0xff]  }
  0x20   :  { %1700 = vmatprep.subr.bf16.mxu1 %v3308_v5  ;;  %v3312_v8 = vld [vmem:[#allocation2 + $0xa4] ss:$16 sps:$4 sm:$0xff]   ;;  %v3316_v10 = vld [vmem:[#allocation2 + $0xa0] ss:$16 sps:$4 sm:$0xff]   ;;  %1730 = vmatprep.mubr.bf16.mxu1 %v3942_v51 }
  0x21   :  { %v3314_v9 = vld [vmem:[#allocation2 + $0x2a4] ss:$16 sps:$4 sm:$0xff]   ;;  %v3317_v11 = vld [vmem:[#allocation2 + $0x2a0] ss:$16 sps:$4 sm:$0xff]  }
  0x22   :  { %1660 = vmatpush1.bf16.msra.mxu0 %v3310_v6  ;;  %v3318_v12 = vld [vmem:[#allocation2 + $0x84] ss:$16 sps:$4 sm:$0xff]   ;;  %v3322_v14 = vld [vmem:[#allocation2 + $0x80] ss:$16 sps:$4 sm:$0xff]  }
  0x23   :  { %1701 = vmatpush1.bf16.msra.mxu1 %v3311_v7  ;;  %1661 = vmatprep.subr.bf16.mxu0 %v3312_v8  ;;  %v3320_v13 = vld [vmem:[#allocation2 + $0x284] ss:$16 sps:$4 sm:$0xff]   ;;  %v3323_v15 = vld [vmem:[#allocation2 + $0x280] ss:$16 sps:$4 sm:$0xff]   ;;  %v3948_v7 = vcombine.low %v68_v48, %v68_v48 }
  0x24   :  { %1702 = vmatprep.subr.bf16.mxu1 %v3314_v9  ;;  %v3324_v16 = vld [vmem:[#allocation2 + $0x64] ss:$16 sps:$4 sm:$0xff]   ;;  %v3328_v18 = vld [vmem:[#allocation2 + $0x60] ss:$16 sps:$4 sm:$0xff]  }
  0x25   :  { %v3326_v17 = vld [vmem:[#allocation2 + $0x264] ss:$16 sps:$4 sm:$0xff]   ;;  %v3329_v19 = vld [vmem:[#allocation2 + $0x260] ss:$16 sps:$4 sm:$0xff]  }
  0x26   :  { %1662 = vmatpush1.bf16.msra.mxu0 %v3316_v10  ;;  %v3330_v20 = vld [vmem:[#allocation2 + $0x44] ss:$16 sps:$4 sm:$0xff]   ;;  %v3334_v22 = vld [vmem:[#allocation2 + $0x40] ss:$16 sps:$4 sm:$0xff]  }
  0x27   :  { %1703 = vmatpush1.bf16.msra.mxu1 %v3317_v11  ;;  %1663 = vmatprep.subr.bf16.mxu0 %v3318_v12  ;;  %v3332_v21 = vld [vmem:[#allocation2 + $0x244] ss:$16 sps:$4 sm:$0xff]   ;;  %v3335_v23 = vld [vmem:[#allocation2 + $0x240] ss:$16 sps:$4 sm:$0xff]  }
  0x28   :  { %1704 = vmatprep.subr.bf16.mxu1 %v3320_v13  ;;  %v3336_v24 = vld [vmem:[#allocation2 + $0x24] ss:$16 sps:$4 sm:$0xff]   ;;  %v3340_v26 = vld [vmem:[#allocation2 + $0x20] ss:$16 sps:$4 sm:$0xff]  }
  0x29   :  { %v3338_v25 = vld [vmem:[#allocation2 + $0x224] ss:$16 sps:$4 sm:$0xff]   ;;  %v3341_v27 = vld [vmem:[#allocation2 + $0x220] ss:$16 sps:$4 sm:$0xff]  }
  0x2a   :  { %1664 = vmatpush1.bf16.msra.mxu0 %v3322_v14  ;;  %v3342_v28 = vld [vmem:[#allocation2 + $0x4] ss:$16 sps:$4 sm:$0xff]   ;;  %v3346_v30 = vld [vmem:[#allocation2] ss:$16 sps:$4 sm:$0xff]  }
  0x2b   :  { %1705 = vmatpush1.bf16.msra.mxu1 %v3323_v15  ;;  %1665 = vmatprep.subr.bf16.mxu0 %v3324_v16  ;;  %v3344_v29 = vld [vmem:[#allocation2 + $0x204] ss:$16 sps:$4 sm:$0xff]   ;;  %v3347_v31 = vld [vmem:[#allocation2 + $0x200] ss:$16 sps:$4 sm:$0xff]  }
  0x2c   :  { %1706 = vmatprep.subr.bf16.mxu1 %v3326_v17  ;;  %v3348_v32 = vld [vmem:[#allocation2 + $0x1e4] ss:$16 sps:$4 sm:$0xff]   ;;  %v3352_v34 = vld [vmem:[#allocation2 + $0x1e0] ss:$16 sps:$4 sm:$0xff]  }
  0x2d   :  { %v3350_v33 = vld [vmem:[#allocation2 + $0x3e4] ss:$16 sps:$4 sm:$0xff]   ;;  %v3353_v35 = vld [vmem:[#allocation2 + $0x3e0] ss:$16 sps:$4 sm:$0xff]  }
  0x2e   :  { %1666 = vmatpush1.bf16.msra.mxu0 %v3328_v18  ;;  %v3354_v36 = vld [vmem:[#allocation2 + $0x1c4] ss:$16 sps:$4 sm:$0xff]   ;;  %v3358_v38 = vld [vmem:[#allocation2 + $0x1c0] ss:$16 sps:$4 sm:$0xff]  }
  0x2f   :  { %1707 = vmatpush1.bf16.msra.mxu1 %v3329_v19  ;;  %1667 = vmatprep.subr.bf16.mxu0 %v3330_v20  ;;  %v3356_v37 = vld [vmem:[#allocation2 + $0x3c4] ss:$16 sps:$4 sm:$0xff]   ;;  %v3359_v39 = vld [vmem:[#allocation2 + $0x3c0] ss:$16 sps:$4 sm:$0xff]  }
  0x30   :  { %1708 = vmatprep.subr.bf16.mxu1 %v3332_v21  ;;  %v3360_v40 = vld [vmem:[#allocation2 + $0x1a4] ss:$16 sps:$4 sm:$0xff]   ;;  %v3364_v42 = vld [vmem:[#allocation2 + $0x1a0] ss:$16 sps:$4 sm:$0xff]  }
  0x31   :  { %v3362_v41 = vld [vmem:[#allocation2 + $0x3a4] ss:$16 sps:$4 sm:$0xff]   ;;  %v3365_v43 = vld [vmem:[#allocation2 + $0x3a0] ss:$16 sps:$4 sm:$0xff]  }
  0x32   :  { %1668 = vmatpush1.bf16.msra.mxu0 %v3334_v22  ;;  %v3366_v44 = vld [vmem:[#allocation2 + $0x184] ss:$16 sps:$4 sm:$0xff]   ;;  %v3370_v49 = vld [vmem:[#allocation2 + $0x180] ss:$16 sps:$4 sm:$0xff]  }
  0x33   :  { %1709 = vmatpush1.bf16.msra.mxu1 %v3335_v23  ;;  %1669 = vmatprep.subr.bf16.mxu0 %v3336_v24  ;;  %v3368_v45 = vld [vmem:[#allocation2 + $0x384] ss:$16 sps:$4 sm:$0xff]   ;;  %v3371_v50 = vld [vmem:[#allocation2 + $0x380] ss:$16 sps:$4 sm:$0xff]  }
  0x34   :  { %1710 = vmatprep.subr.bf16.mxu1 %v3338_v25  ;;  %v67_v46 = vld [vmem:[%s4138_s0] sm:$0xff] }
  0x35   :  { %v3937_v47 = vcombine.high %v67_v46, %v67_v46  ;;  %v3372_v52 = vld [vmem:[#allocation2 + $0x164] ss:$16 sps:$4 sm:$0xff]   ;;  %v3376_v54 = vld [vmem:[#allocation2 + $0x160] ss:$16 sps:$4 sm:$0xff]   ;;  %v3946_v6 = vcombine.low %v67_v46, %v67_v46 }
  0x36   :  { %1670 = vmatpush1.bf16.msra.mxu0 %v3340_v26  ;;  %v3374_v53 = vld [vmem:[#allocation2 + $0x364] ss:$16 sps:$4 sm:$0xff]   ;;  %v3377_v55 = vld [vmem:[#allocation2 + $0x360] ss:$16 sps:$4 sm:$0xff]  }
  0x37   :  { %1711 = vmatpush1.bf16.msra.mxu1 %v3341_v27  ;;  %1671 = vmatprep.subr.bf16.mxu0 %v3342_v28  ;;  %v3378_v56 = vld [vmem:[#allocation2 + $0x144] ss:$16 sps:$4 sm:$0xff]   ;;  %v3382_v58 = vld [vmem:[#allocation2 + $0x140] ss:$16 sps:$4 sm:$0xff]  }
  0x38   :  { %1712 = vmatprep.subr.bf16.mxu1 %v3344_v29  ;;  %1689 = vmatprep.mubr.bf16.mxu0 %v3937_v47  ;;  %v3380_v57 = vld [vmem:[#allocation2 + $0x344] ss:$16 sps:$4 sm:$0xff]   ;;  %v3383_v59 = vld [vmem:[#allocation2 + $0x340] ss:$16 sps:$4 sm:$0xff]  }
  0x39   :  { %v3384_v60 = vld [vmem:[#allocation2 + $0x124] ss:$16 sps:$4 sm:$0xff]   ;;  %v3388_v62 = vld [vmem:[#allocation2 + $0x120] ss:$16 sps:$4 sm:$0xff]  }
  0x3a   :  { %1672 = vmatpush1.bf16.msra.mxu0 %v3346_v30  ;;  %v3386_v61 = vld [vmem:[#allocation2 + $0x324] ss:$16 sps:$4 sm:$0xff]   ;;  %v3389_v63 = vld [vmem:[#allocation2 + $0x320] ss:$16 sps:$4 sm:$0xff]  }
  0x3b   :  { %1713 = vmatpush1.bf16.msra.mxu1 %v3347_v31  ;;  %1673 = vmatprep.subr.bf16.mxu0 %v3348_v32  ;;  %v3390_v0 = vld [vmem:[#allocation2 + $0x104] ss:$16 sps:$4 sm:$0xff]   ;;  %v3394_v2 = vld [vmem:[#allocation2 + $0x100] ss:$16 sps:$4 sm:$0xff]  }
  0x3c   :  { %1714 = vmatprep.subr.bf16.mxu1 %v3350_v33  ;;  %v3392_v1 = vld [vmem:[#allocation2 + $0x304] ss:$16 sps:$4 sm:$0xff]   ;;  %v3395_v3 = vld [vmem:[#allocation2 + $0x300] ss:$16 sps:$4 sm:$0xff]   ;;  %v3960_v33 = vld [vmem:[%s4138_s0 + $0x18] sm:$0xff] }
  0x3d   :  { %v3402_v4 = vld [vmem:[#allocation2 + $0x4e4] ss:$16 sps:$4 sm:$0xff]   ;;  %v3400_v8 = vld [vmem:[#allocation2 + $0x4e0] ss:$16 sps:$4 sm:$0xff]  }
  0x3e   :  { %1674 = vmatpush2.bf16.msra.mxu0 %v3352_v34  ;;  %v3405_v5 = vld [vmem:[#allocation2 + $0x6e4] ss:$16 sps:$4 sm:$0xff]   ;;  %v3403_v9 = vld [vmem:[#allocation2 + $0x6e0] ss:$16 sps:$4 sm:$0xff]  }
  0x3f   :  { %1715 = vmatpush2.bf16.msra.mxu1 %v3353_v35  ;;  %1675 = vmatprep.subr.bf16.mxu0 %v3354_v36  ;;  %v3408_v10 = vld [vmem:[#allocation2 + $0x4c4] ss:$16 sps:$4 sm:$0xff]   ;;  %v3406_v12 = vld [vmem:[#allocation2 + $0x4c0] ss:$16 sps:$4 sm:$0xff]  }
  0x40   :  { %1716 = vmatprep.subr.bf16.mxu1 %v3356_v37  ;;  %v3411_v11 = vld [vmem:[#allocation2 + $0x6c4] ss:$16 sps:$4 sm:$0xff]   ;;  %v3409_v13 = vld [vmem:[#allocation2 + $0x6c0] ss:$16 sps:$4 sm:$0xff]   ;;  %v3968_v37 = vcombine.high %v3960_v33, %v3960_v33 }
  0x41   :  { %v3414_v14 = vld [vmem:[#allocation2 + $0x4a4] ss:$16 sps:$4 sm:$0xff]   ;;  %v3412_v16 = vld [vmem:[#allocation2 + $0x4a0] ss:$16 sps:$4 sm:$0xff]  }
  0x42   :  { %1676 = vmatpush2.bf16.msra.mxu0 %v3358_v38  ;;  %v3417_v15 = vld [vmem:[#allocation2 + $0x6a4] ss:$16 sps:$4 sm:$0xff]   ;;  %v3415_v17 = vld [vmem:[#allocation2 + $0x6a0] ss:$16 sps:$4 sm:$0xff]  }
  0x43   :  { %1717 = vmatpush2.bf16.msra.mxu1 %v3359_v39  ;;  %1677 = vmatprep.subr.bf16.mxu0 %v3360_v40  ;;  %v3420_v18 = vld [vmem:[#allocation2 + $0x484] ss:$16 sps:$4 sm:$0xff]   ;;  %v3418_v20 = vld [vmem:[#allocation2 + $0x480] ss:$16 sps:$4 sm:$0xff]  }
  0x44   :  { %1718 = vmatprep.subr.bf16.mxu1 %v3362_v41  ;;  %v3423_v19 = vld [vmem:[#allocation2 + $0x684] ss:$16 sps:$4 sm:$0xff]   ;;  %v3421_v21 = vld [vmem:[#allocation2 + $0x680] ss:$16 sps:$4 sm:$0xff]  }
  0x45   :  { %v3426_v22 = vld [vmem:[#allocation2 + $0x464] ss:$16 sps:$4 sm:$0xff]   ;;  %v3424_v24 = vld [vmem:[#allocation2 + $0x460] ss:$16 sps:$4 sm:$0xff]  }
  0x46   :  { %1678 = vmatpush2.bf16.msra.mxu0 %v3364_v42  ;;  %v3429_v23 = vld [vmem:[#allocation2 + $0x664] ss:$16 sps:$4 sm:$0xff]   ;;  %v3427_v25 = vld [vmem:[#allocation2 + $0x660] ss:$16 sps:$4 sm:$0xff]  }
  0x47   :  { %1719 = vmatpush2.bf16.msra.mxu1 %v3365_v43  ;;  %1679 = vmatprep.subr.bf16.mxu0 %v3366_v44  ;;  %v3432_v26 = vld [vmem:[#allocation2 + $0x444] ss:$16 sps:$4 sm:$0xff]   ;;  %v3430_v28 = vld [vmem:[#allocation2 + $0x440] ss:$16 sps:$4 sm:$0xff]  }
  0x48   :  { %1720 = vmatprep.subr.bf16.mxu1 %v3368_v45  ;;  %v3435_v27 = vld [vmem:[#allocation2 + $0x644] ss:$16 sps:$4 sm:$0xff]   ;;  %v3433_v29 = vld [vmem:[#allocation2 + $0x640] ss:$16 sps:$4 sm:$0xff]  }
  0x49   :  { %v3438_v30 = vld [vmem:[#allocation2 + $0x424] ss:$16 sps:$4 sm:$0xff]   ;;  %v3436_v34 = vld [vmem:[#allocation2 + $0x420] ss:$16 sps:$4 sm:$0xff]  }
  0x4a   :  { %1680 = vmatpush2.bf16.msra.mxu0 %v3370_v49  ;;  %v3441_v31 = vld [vmem:[#allocation2 + $0x624] ss:$16 sps:$4 sm:$0xff]   ;;  %v3439_v35 = vld [vmem:[#allocation2 + $0x620] ss:$16 sps:$4 sm:$0xff]  }
  0x4b   :  { %1721 = vmatpush2.bf16.msra.mxu1 %v3371_v50  ;;  %1681 = vmatprep.subr.bf16.mxu0 %v3372_v52  ;;  %v3955_v32 = vld [vmem:[%s4138_s0 + $0x10] sm:$0xff] }
  0x4c   :  { %1722 = vmatprep.subr.bf16.mxu1 %v3374_v53  ;;  %v3964_v36 = vcombine.high %v3955_v32, %v3955_v32  ;;  %v3444_v38 = vld [vmem:[#allocation2 + $0x404] ss:$16 sps:$4 sm:$0xff]   ;;  %v3442_v40 = vld [vmem:[#allocation2 + $0x400] ss:$16 sps:$4 sm:$0xff]  }
  0x4d   :  { %v3447_v39 = vld [vmem:[#allocation2 + $0x604] ss:$16 sps:$4 sm:$0xff]   ;;  %v3445_v41 = vld [vmem:[#allocation2 + $0x600] ss:$16 sps:$4 sm:$0xff]  }
  0x4e   :  { %1682 = vmatpush2.bf16.msra.mxu0 %v3376_v54  ;;  %v3450_v42 = vld [vmem:[#allocation2 + $0x5e4] ss:$16 sps:$4 sm:$0xff]   ;;  %v3448_v44 = vld [vmem:[#allocation2 + $0x5e0] ss:$16 sps:$4 sm:$0xff]  }
  0x4f   :  { %1723 = vmatpush2.bf16.msra.mxu1 %v3377_v55  ;;  %1683 = vmatprep.subr.bf16.mxu0 %v3378_v56  ;;  %v3453_v43 = vld [vmem:[#allocation2 + $0x7e4] ss:$16 sps:$4 sm:$0xff]   ;;  %v3451_v45 = vld [vmem:[#allocation2 + $0x7e0] ss:$16 sps:$4 sm:$0xff]  }
  0x50   :  { %1724 = vmatprep.subr.bf16.mxu1 %v3380_v57  ;;  %v3456_v46 = vld [vmem:[#allocation2 + $0x5c4] ss:$16 sps:$4 sm:$0xff]   ;;  %v3454_v49 = vld [vmem:[#allocation2 + $0x5c0] ss:$16 sps:$4 sm:$0xff]  }
  0x51   :  { %v3459_v48 = vld [vmem:[#allocation2 + $0x7c4] ss:$16 sps:$4 sm:$0xff]   ;;  %v3457_v50 = vld [vmem:[#allocation2 + $0x7c0] ss:$16 sps:$4 sm:$0xff]  }
  0x52   :  { %1684 = vmatpush2.bf16.msra.mxu0 %v3382_v58  ;;  %v3462_v52 = vld [vmem:[#allocation2 + $0x5a4] ss:$16 sps:$4 sm:$0xff]   ;;  %v3460_v54 = vld [vmem:[#allocation2 + $0x5a0] ss:$16 sps:$4 sm:$0xff]  }
  0x53   :  { %1725 = vmatpush2.bf16.msra.mxu1 %v3383_v59  ;;  %1685 = vmatprep.subr.bf16.mxu0 %v3384_v60  ;;  %v3465_v53 = vld [vmem:[#allocation2 + $0x7a4] ss:$16 sps:$4 sm:$0xff]   ;;  %v3463_v55 = vld [vmem:[#allocation2 + $0x7a0] ss:$16 sps:$4 sm:$0xff]  }
  0x54   :  { %1726 = vmatprep.subr.bf16.mxu1 %v3386_v61  ;;  %v3468_v56 = vld [vmem:[#allocation2 + $0x584] ss:$16 sps:$4 sm:$0xff]   ;;  %v3466_v58 = vld [vmem:[#allocation2 + $0x580] ss:$16 sps:$4 sm:$0xff]  }
  0x55   :  { %v3471_v57 = vld [vmem:[#allocation2 + $0x784] ss:$16 sps:$4 sm:$0xff]   ;;  %v3469_v59 = vld [vmem:[#allocation2 + $0x780] ss:$16 sps:$4 sm:$0xff]  }
  0x56   :  { %1686 = vmatpush2.bf16.msra.mxu0 %v3388_v62  ;;  %v3474_v60 = vld [vmem:[#allocation2 + $0x564] ss:$16 sps:$4 sm:$0xff]   ;;  %v3472_v62 = vld [vmem:[#allocation2 + $0x560] ss:$16 sps:$4 sm:$0xff]  }
  0x57   :  { %1727 = vmatpush2.bf16.msra.mxu1 %v3389_v63  ;;  %1687 = vmatprep.subr.bf16.mxu0 %v3390_v0  ;;  %v3477_v61 = vld [vmem:[#allocation2 + $0x764] ss:$16 sps:$4 sm:$0xff]   ;;  %v3475_v63 = vld [vmem:[#allocation2 + $0x760] ss:$16 sps:$4 sm:$0xff]  }
  0x58   :  { %1728 = vmatprep.subr.bf16.mxu1 %v3392_v1  ;;  %v3480_v0 = vld [vmem:[#allocation2 + $0x544] ss:$16 sps:$4 sm:$0xff]  }
  0x59   :  { %v3483_v1 = vld [vmem:[#allocation2 + $0x744] ss:$16 sps:$4 sm:$0xff]  }
  0x5a   :  { %1688 = vmatpush2.bf16.msra.mxu0 %v3394_v2  ;;  %v3478_v2 = vld [vmem:[#allocation2 + $0x540] ss:$16 sps:$4 sm:$0xff]  }
  0x5b   :  { %1729 = vmatpush2.bf16.msra.mxu1 %v3395_v3  ;;  %1739 = vmatprep.subr.bf16.mxu0 %v3402_v4  ;;  %v3481_v3 = vld [vmem:[#allocation2 + $0x740] ss:$16 sps:$4 sm:$0xff]   ;;  %v3486_v4 = vld [vmem:[#allocation2 + $0x524] ss:$16 sps:$4 sm:$0xff]  }
  0x5c   :  { %1780 = vmatprep.subr.bf16.mxu1 %v3405_v5  ;;  %v3489_v5 = vld [vmem:[#allocation2 + $0x724] ss:$16 sps:$4 sm:$0xff]  }
  0x5d   :  { %1690 = vmatmul.mubr.bf16.vlgmr.msra.gmra.mxu0 %v3946_v6 }
  0x5e   :  { %1731 = vmatmul.mubr.bf16.vlgmr.msra.gmra.mxu1 %v3948_v7  ;;  %1740 = vmatpush1.bf16.msra.mxu0 %v3400_v8  ;;  %v3484_v8 = vld [vmem:[#allocation2 + $0x520] ss:$16 sps:$4 sm:$0xff]  }
  0x5f   :  { %1781 = vmatpush1.bf16.msra.mxu1 %v3403_v9  ;;  %1741 = vmatprep.subr.bf16.mxu0 %v3408_v10  ;;  %v3487_v9 = vld [vmem:[#allocation2 + $0x720] ss:$16 sps:$4 sm:$0xff]   ;;  %v3492_v10 = vld [vmem:[#allocation2 + $0x504] ss:$16 sps:$4 sm:$0xff]  }
  0x60   :  { %1782 = vmatprep.subr.bf16.mxu1 %v3411_v11  ;;  %1771 = vmatprep.mubr.bf16.mxu0 %v3964_v36  ;;  %v3495_v11 = vld [vmem:[#allocation2 + $0x704] ss:$16 sps:$4 sm:$0xff]  }
  0x61   :  { %1812 = vmatprep.mubr.bf16.mxu1 %v3968_v37 }
  0x62   :  { %1742 = vmatpush1.bf16.msra.mxu0 %v3406_v12  ;;  %v3490_v12 = vld [vmem:[#allocation2 + $0x500] ss:$16 sps:$4 sm:$0xff]  }
  0x63   :  { %1783 = vmatpush1.bf16.msra.mxu1 %v3409_v13  ;;  %1743 = vmatprep.subr.bf16.mxu0 %v3414_v14  ;;  %v3493_v13 = vld [vmem:[#allocation2 + $0x700] ss:$16 sps:$4 sm:$0xff]   ;;  %v3502_v14 = vld [vmem:[#allocation2 + $0xec] ss:$16 sps:$4 sm:$0xff]  }
  0x64   :  { %1784 = vmatprep.subr.bf16.mxu1 %v3417_v15  ;;  %v3505_v15 = vld [vmem:[#allocation2 + $0x2ec] ss:$16 sps:$4 sm:$0xff]  }
  0x66   :  { %1744 = vmatpush1.bf16.msra.mxu0 %v3412_v16  ;;  %v3974_v16 = vcombine.low %v3955_v32, %v3955_v32  ;;  %v3526_v32 = vld [vmem:[#allocation2 + $0x6c] ss:$16 sps:$4 sm:$0xff]  }
  0x67   :  { %1785 = vmatpush1.bf16.msra.mxu1 %v3415_v17  ;;  %1745 = vmatprep.subr.bf16.mxu0 %v3420_v18  ;;  %v3978_v17 = vcombine.low %v3960_v33, %v3960_v33  ;;  %v3500_v18 = vld [vmem:[#allocation2 + $0xe8] ss:$16 sps:$4 sm:$0xff]   ;;  %v3529_v33 = vld [vmem:[#allocation2 + $0x26c] ss:$16 sps:$4 sm:$0xff]  }
  0x68   :  { %1786 = vmatprep.subr.bf16.mxu1 %v3423_v19  ;;  %v3503_v19 = vld [vmem:[#allocation2 + $0x2e8] ss:$16 sps:$4 sm:$0xff]  }
  0x6a   :  { %1746 = vmatpush1.bf16.msra.mxu0 %v3418_v20  ;;  %v3508_v20 = vld [vmem:[#allocation2 + $0xcc] ss:$16 sps:$4 sm:$0xff]  }
  0x6b   :  { %1787 = vmatpush1.bf16.msra.mxu1 %v3421_v21  ;;  %1747 = vmatprep.subr.bf16.mxu0 %v3426_v22  ;;  %v3511_v21 = vld [vmem:[#allocation2 + $0x2cc] ss:$16 sps:$4 sm:$0xff]   ;;  %v3506_v22 = vld [vmem:[#allocation2 + $0xc8] ss:$16 sps:$4 sm:$0xff]  }
  0x6c   :  { %1788 = vmatprep.subr.bf16.mxu1 %v3429_v23  ;;  %v3509_v23 = vld [vmem:[#allocation2 + $0x2c8] ss:$16 sps:$4 sm:$0xff]  }
  0x6e   :  { %1748 = vmatpush1.bf16.msra.mxu0 %v3424_v24  ;;  %v3514_v24 = vld [vmem:[#allocation2 + $0xac] ss:$16 sps:$4 sm:$0xff]  }
  0x6f   :  { %1789 = vmatpush1.bf16.msra.mxu1 %v3427_v25  ;;  %1749 = vmatprep.subr.bf16.mxu0 %v3432_v26  ;;  %v3517_v25 = vld [vmem:[#allocation2 + $0x2ac] ss:$16 sps:$4 sm:$0xff]   ;;  %v3512_v26 = vld [vmem:[#allocation2 + $0xa8] ss:$16 sps:$4 sm:$0xff]  }
  0x70   :  { %1790 = vmatprep.subr.bf16.mxu1 %v3435_v27  ;;  %v3515_v27 = vld [vmem:[#allocation2 + $0x2a8] ss:$16 sps:$4 sm:$0xff]  }
  0x72   :  { %1750 = vmatpush1.bf16.msra.mxu0 %v3430_v28  ;;  %v3520_v28 = vld [vmem:[#allocation2 + $0x8c] ss:$16 sps:$4 sm:$0xff]  }
  0x73   :  { %1791 = vmatpush1.bf16.msra.mxu1 %v3433_v29  ;;  %1751 = vmatprep.subr.bf16.mxu0 %v3438_v30  ;;  %v3523_v29 = vld [vmem:[#allocation2 + $0x28c] ss:$16 sps:$4 sm:$0xff]   ;;  %v3518_v30 = vld [vmem:[#allocation2 + $0x88] ss:$16 sps:$4 sm:$0xff]  }
  0x74   :  { %1792 = vmatprep.subr.bf16.mxu1 %v3441_v31  ;;  %v3521_v31 = vld [vmem:[#allocation2 + $0x288] ss:$16 sps:$4 sm:$0xff]  }
  0x76   :  { %1752 = vmatpush1.bf16.msra.mxu0 %v3436_v34  ;;  %v3524_v34 = vld [vmem:[#allocation2 + $0x68] ss:$16 sps:$4 sm:$0xff]  }
  0x77   :  { %1793 = vmatpush1.bf16.msra.mxu1 %v3439_v35  ;;  %1753 = vmatprep.subr.bf16.mxu0 %v3444_v38  ;;  %v3535_v35 = vld [vmem:[#allocation2 + $0x24c] ss:$16 sps:$4 sm:$0xff]   ;;  %v3530_v38 = vld [vmem:[#allocation2 + $0x48] ss:$16 sps:$4 sm:$0xff]  }
  0x78   :  { %1794 = vmatprep.subr.bf16.mxu1 %v3447_v39  ;;  %v3533_v39 = vld [vmem:[#allocation2 + $0x248] ss:$16 sps:$4 sm:$0xff]  }
  0x7a   :  { %1754 = vmatpush1.bf16.msra.mxu0 %v3442_v40  ;;  %v3538_v40 = vld [vmem:[#allocation2 + $0x2c] ss:$16 sps:$4 sm:$0xff]  }
  0x7b   :  { %1795 = vmatpush1.bf16.msra.mxu1 %v3445_v41  ;;  %1755 = vmatprep.subr.bf16.mxu0 %v3450_v42  ;;  %v3541_v41 = vld [vmem:[#allocation2 + $0x22c] ss:$16 sps:$4 sm:$0xff]   ;;  %v3536_v42 = vld [vmem:[#allocation2 + $0x28] ss:$16 sps:$4 sm:$0xff]  }
  0x7c   :  { %1796 = vmatprep.subr.bf16.mxu1 %v3453_v43  ;;  %v3539_v43 = vld [vmem:[#allocation2 + $0x228] ss:$16 sps:$4 sm:$0xff]  }
  0x7e   :  { %1756 = vmatpush2.bf16.msra.mxu0 %v3448_v44  ;;  %v3544_v44 = vld [vmem:[#allocation2 + $0xc] ss:$16 sps:$4 sm:$0xff]  }
  0x7f   :  { %1797 = vmatpush2.bf16.msra.mxu1 %v3451_v45  ;;  %1757 = vmatprep.subr.bf16.mxu0 %v3456_v46  ;;  %v3547_v45 = vld [vmem:[#allocation2 + $0x20c] ss:$16 sps:$4 sm:$0xff]   ;;  %v3542_v46 = vld [vmem:[#allocation2 + $0x8] ss:$16 sps:$4 sm:$0xff]  }
  0x80   :  { %1798 = vmatprep.subr.bf16.mxu1 %v3459_v48  ;;  %v3545_v48 = vld [vmem:[#allocation2 + $0x208] ss:$16 sps:$4 sm:$0xff]  }
  0x82   :  { %1758 = vmatpush2.bf16.msra.mxu0 %v3454_v49  ;;  %v3550_v49 = vld [vmem:[#allocation2 + $0x1ec] ss:$16 sps:$4 sm:$0xff]  }
  0x83   :  { %1799 = vmatpush2.bf16.msra.mxu1 %v3457_v50  ;;  %1759 = vmatprep.subr.bf16.mxu0 %v3462_v52  ;;  %v3553_v50 = vld [vmem:[#allocation2 + $0x3ec] ss:$16 sps:$4 sm:$0xff]   ;;  %v3548_v52 = vld [vmem:[#allocation2 + $0x1e8] ss:$16 sps:$4 sm:$0xff]  }
  0x84   :  { %1800 = vmatprep.subr.bf16.mxu1 %v3465_v53  ;;  %v3551_v53 = vld [vmem:[#allocation2 + $0x3e8] ss:$16 sps:$4 sm:$0xff]  }
  0x86   :  { %1760 = vmatpush2.bf16.msra.mxu0 %v3460_v54  ;;  %v3556_v54 = vld [vmem:[#allocation2 + $0x1cc] ss:$16 sps:$4 sm:$0xff]  }
  0x87   :  { %1801 = vmatpush2.bf16.msra.mxu1 %v3463_v55  ;;  %1761 = vmatprep.subr.bf16.mxu0 %v3468_v56  ;;  %v3559_v55 = vld [vmem:[#allocation2 + $0x3cc] ss:$16 sps:$4 sm:$0xff]   ;;  %v3554_v56 = vld [vmem:[#allocation2 + $0x1c8] ss:$16 sps:$4 sm:$0xff]  }
  0x88   :  { %1802 = vmatprep.subr.bf16.mxu1 %v3471_v57  ;;  %v3557_v57 = vld [vmem:[#allocation2 + $0x3c8] ss:$16 sps:$4 sm:$0xff]  }
  0x8a   :  { %1762 = vmatpush2.bf16.msra.mxu0 %v3466_v58  ;;  %v3562_v58 = vld [vmem:[#allocation2 + $0x1ac] ss:$16 sps:$4 sm:$0xff]  }
  0x8b   :  { %1803 = vmatpush2.bf16.msra.mxu1 %v3469_v59  ;;  %1763 = vmatprep.subr.bf16.mxu0 %v3474_v60  ;;  %v3565_v59 = vld [vmem:[#allocation2 + $0x3ac] ss:$16 sps:$4 sm:$0xff]   ;;  %v3560_v60 = vld [vmem:[#allocation2 + $0x1a8] ss:$16 sps:$4 sm:$0xff]  }
  0x8c   :  { %1804 = vmatprep.subr.bf16.mxu1 %v3477_v61  ;;  %v3563_v61 = vld [vmem:[#allocation2 + $0x3a8] ss:$16 sps:$4 sm:$0xff]  }
  0x8e   :  { %1764 = vmatpush2.bf16.msra.mxu0 %v3472_v62  ;;  %v3568_v62 = vld [vmem:[#allocation2 + $0x18c] ss:$16 sps:$4 sm:$0xff]  }
  0x8f   :  { %1805 = vmatpush2.bf16.msra.mxu1 %v3475_v63  ;;  %1765 = vmatprep.subr.bf16.mxu0 %v3480_v0  ;;  %v3571_v63 = vld [vmem:[#allocation2 + $0x38c] ss:$16 sps:$4 sm:$0xff]   ;;  %v3566_v0 = vld [vmem:[#allocation2 + $0x188] ss:$16 sps:$4 sm:$0xff]  }
  0x90   :  { %1806 = vmatprep.subr.bf16.mxu1 %v3483_v1  ;;  %v3569_v1 = vld [vmem:[#allocation2 + $0x388] ss:$16 sps:$4 sm:$0xff]  }
  0x92   :  { %1766 = vmatpush2.bf16.msra.mxu0 %v3478_v2  ;;  %v3574_v2 = vld [vmem:[#allocation2 + $0x16c] ss:$16 sps:$4 sm:$0xff]  }
  0x93   :  { %1807 = vmatpush2.bf16.msra.mxu1 %v3481_v3  ;;  %1767 = vmatprep.subr.bf16.mxu0 %v3486_v4  ;;  %v3577_v3 = vld [vmem:[#allocation2 + $0x36c] ss:$16 sps:$4 sm:$0xff]   ;;  %v3572_v4 = vld [vmem:[#allocation2 + $0x168] ss:$16 sps:$4 sm:$0xff]  }
  0x94   :  { %1808 = vmatprep.subr.bf16.mxu1 %v3489_v5  ;;  %v3575_v5 = vld [vmem:[#allocation2 + $0x368] ss:$16 sps:$4 sm:$0xff]  }
  0x96   :  { %1768 = vmatpush2.bf16.msra.mxu0 %v3484_v8  ;;  %v3580_v8 = vld [vmem:[#allocation2 + $0x14c] ss:$16 sps:$4 sm:$0xff]  }
  0x97   :  { %1809 = vmatpush2.bf16.msra.mxu1 %v3487_v9  ;;  %1769 = vmatprep.subr.bf16.mxu0 %v3492_v10  ;;  %v3583_v9 = vld [vmem:[#allocation2 + $0x34c] ss:$16 sps:$4 sm:$0xff]   ;;  %v3578_v10 = vld [vmem:[#allocation2 + $0x148] ss:$16 sps:$4 sm:$0xff]  }
  0x98   :  { %1810 = vmatprep.subr.bf16.mxu1 %v3495_v11  ;;  %v3581_v11 = vld [vmem:[#allocation2 + $0x348] ss:$16 sps:$4 sm:$0xff]  }
  0x9a   :  { %1770 = vmatpush2.bf16.msra.mxu0 %v3490_v12  ;;  %v3586_v12 = vld [vmem:[#allocation2 + $0x12c] ss:$16 sps:$4 sm:$0xff]  }
  0x9b   :  { %1811 = vmatpush2.bf16.msra.mxu1 %v3493_v13  ;;  %1821 = vmatprep.subr.bf16.mxu0 %v3502_v14  ;;  %v3589_v13 = vld [vmem:[#allocation2 + $0x32c] ss:$16 sps:$4 sm:$0xff]   ;;  %v3584_v14 = vld [vmem:[#allocation2 + $0x128] ss:$16 sps:$4 sm:$0xff]  }
  0x9c   :  { %1862 = vmatprep.subr.bf16.mxu1 %v3505_v15  ;;  %v3587_v15 = vld [vmem:[#allocation2 + $0x328] ss:$16 sps:$4 sm:$0xff]  }
  0x9d   :  { %1772 = vmatmul.mubr.bf16.vlgmr.msra.gmra.mxu0 %v3974_v16 }
  0x9e   :  { %1813 = vmatmul.mubr.bf16.vlgmr.msra.gmra.mxu1 %v3978_v17  ;;  %1822 = vmatpush1.bf16.msra.mxu0 %v3500_v18  ;;  %v3592_v18 = vld [vmem:[#allocation2 + $0x10c] ss:$16 sps:$4 sm:$0xff]  }
  0x9f   :  { %1863 = vmatpush1.bf16.msra.mxu1 %v3503_v19  ;;  %1823 = vmatprep.subr.bf16.mxu0 %v3508_v20  ;;  %v3595_v19 = vld [vmem:[#allocation2 + $0x30c] ss:$16 sps:$4 sm:$0xff]   ;;  %v3590_v20 = vld [vmem:[#allocation2 + $0x108] ss:$16 sps:$4 sm:$0xff]  }
  0xa0   :  { %1864 = vmatprep.subr.bf16.mxu1 %v3511_v21  ;;  %1853 = vmatprep.mubr.bf16.mxu0 %v3937_v47  ;;  %v3527_v47 = vld [vmem:[#allocation2 + $0x268] ss:$16 sps:$4 sm:$0xff]  }
  0xa1   :  { %1894 = vmatprep.mubr.bf16.mxu1 %v3942_v51  ;;  %v3532_v51 = vld [vmem:[#allocation2 + $0x4c] ss:$16 sps:$4 sm:$0xff]   ;;  %v3593_v21 = vld [vmem:[#allocation2 + $0x308] ss:$16 sps:$4 sm:$0xff]  }
  0xa2   :  { %1824 = vmatpush1.bf16.msra.mxu0 %v3506_v22  ;;  %v3598_v22 = vld [vmem:[#allocation2 + $0x4ec] ss:$16 sps:$4 sm:$0xff]  }
  0xa3   :  { %1865 = vmatpush1.bf16.msra.mxu1 %v3509_v23  ;;  %1825 = vmatprep.subr.bf16.mxu0 %v3514_v24  ;;  %v3601_v23 = vld [vmem:[#allocation2 + $0x6ec] ss:$16 sps:$4 sm:$0xff]   ;;  %v3596_v24 = vld [vmem:[#allocation2 + $0x4e8] ss:$16 sps:$4 sm:$0xff]  }
  0xa4   :  { %1866 = vmatprep.subr.bf16.mxu1 %v3517_v25  ;;  %v3599_v25 = vld [vmem:[#allocation2 + $0x6e8] ss:$16 sps:$4 sm:$0xff]  }
  0xa6   :  { %1826 = vmatpush1.bf16.msra.mxu0 %v3512_v26  ;;  %v3604_v26 = vld [vmem:[#allocation2 + $0x4cc] ss:$16 sps:$4 sm:$0xff]  }
  0xa7   :  { %1867 = vmatpush1.bf16.msra.mxu1 %v3515_v27  ;;  %1827 = vmatprep.subr.bf16.mxu0 %v3520_v28  ;;  %v3607_v27 = vld [vmem:[#allocation2 + $0x6cc] ss:$16 sps:$4 sm:$0xff]   ;;  %v3602_v28 = vld [vmem:[#allocation2 + $0x4c8] ss:$16 sps:$4 sm:$0xff]  }
  0xa8   :  { %1868 = vmatprep.subr.bf16.mxu1 %v3523_v29  ;;  %v3605_v29 = vld [vmem:[#allocation2 + $0x6c8] ss:$16 sps:$4 sm:$0xff]  }
  0xaa   :  { %1828 = vmatpush1.bf16.msra.mxu0 %v3518_v30  ;;  %v3610_v30 = vld [vmem:[#allocation2 + $0x4ac] ss:$16 sps:$4 sm:$0xff]  }
  0xab   :  { %1869 = vmatpush1.bf16.msra.mxu1 %v3521_v31  ;;  %1829 = vmatprep.subr.bf16.mxu0 %v3526_v32  ;;  %v3613_v31 = vld [vmem:[#allocation2 + $0x6ac] ss:$16 sps:$4 sm:$0xff]   ;;  %v3608_v32 = vld [vmem:[#allocation2 + $0x4a8] ss:$16 sps:$4 sm:$0xff]  }
  0xac   :  { %1870 = vmatprep.subr.bf16.mxu1 %v3529_v33  ;;  %v3611_v33 = vld [vmem:[#allocation2 + $0x6a8] ss:$16 sps:$4 sm:$0xff]  }
  0xae   :  { %1830 = vmatpush1.bf16.msra.mxu0 %v3524_v34  ;;  %v3616_v34 = vld [vmem:[#allocation2 + $0x48c] ss:$16 sps:$4 sm:$0xff]  }
  0xaf   :  { %1871 = vmatpush1.bf16.msra.mxu1 %v3527_v47  ;;  %1831 = vmatprep.subr.bf16.mxu0 %v3532_v51  ;;  %v3619_v47 = vld [vmem:[#allocation2 + $0x68c] ss:$16 sps:$4 sm:$0xff]  }
  0xb0   :  { %1872 = vmatprep.subr.bf16.mxu1 %v3535_v35  ;;  %v3622_v51 = vld [vmem:[#allocation2 + $0x46c] ss:$16 sps:$4 sm:$0xff]  }
  0xb1   :  { %v3625_v35 = vld [vmem:[#allocation2 + $0x66c] ss:$16 sps:$4 sm:$0xff]  }
  0xb2   :  { %1832 = vmatpush1.bf16.msra.mxu0 %v3530_v38  ;;  %v3620_v38 = vld [vmem:[#allocation2 + $0x468] ss:$16 sps:$4 sm:$0xff]  }
  0xb3   :  { %1873 = vmatpush1.bf16.msra.mxu1 %v3533_v39  ;;  %1833 = vmatprep.subr.bf16.mxu0 %v3538_v40  ;;  %v3623_v39 = vld [vmem:[#allocation2 + $0x668] ss:$16 sps:$4 sm:$0xff]   ;;  %v3628_v40 = vld [vmem:[#allocation2 + $0x44c] ss:$16 sps:$4 sm:$0xff]  }
  0xb4   :  { %1874 = vmatprep.subr.bf16.mxu1 %v3541_v41  ;;  %v3629_v41 = vld [vmem:[#allocation2 + $0x648] ss:$16 sps:$4 sm:$0xff]  }
  0xb6   :  { %1834 = vmatpush1.bf16.msra.mxu0 %v3536_v42  ;;  %v3634_v42 = vld [vmem:[#allocation2 + $0x42c] ss:$16 sps:$4 sm:$0xff]  }
  0xb7   :  { %1875 = vmatpush1.bf16.msra.mxu1 %v3539_v43  ;;  %1835 = vmatprep.subr.bf16.mxu0 %v3544_v44  ;;  %v3637_v43 = vld [vmem:[#allocation2 + $0x62c] ss:$16 sps:$4 sm:$0xff]   ;;  %v3632_v44 = vld [vmem:[#allocation2 + $0x428] ss:$16 sps:$4 sm:$0xff]  }
  0xb8   :  { %1876 = vmatprep.subr.bf16.mxu1 %v3547_v45  ;;  %v3635_v45 = vld [vmem:[#allocation2 + $0x628] ss:$16 sps:$4 sm:$0xff]  }
  0xba   :  { %1836 = vmatpush1.bf16.msra.mxu0 %v3542_v46  ;;  %v3640_v46 = vld [vmem:[#allocation2 + $0x40c] ss:$16 sps:$4 sm:$0xff]  }
  0xbb   :  { %1877 = vmatpush1.bf16.msra.mxu1 %v3545_v48  ;;  %1837 = vmatprep.subr.bf16.mxu0 %v3550_v49  ;;  %v3643_v48 = vld [vmem:[#allocation2 + $0x60c] ss:$16 sps:$4 sm:$0xff]   ;;  %v3638_v49 = vld [vmem:[#allocation2 + $0x408] ss:$16 sps:$4 sm:$0xff]  }
  0xbc   :  { %1878 = vmatprep.subr.bf16.mxu1 %v3553_v50  ;;  %v3641_v50 = vld [vmem:[#allocation2 + $0x608] ss:$16 sps:$4 sm:$0xff]  }
  0xbe   :  { %1838 = vmatpush2.bf16.msra.mxu0 %v3548_v52  ;;  %v3646_v52 = vld [vmem:[#allocation2 + $0x5ec] ss:$16 sps:$4 sm:$0xff]  }
  0xbf   :  { %1879 = vmatpush2.bf16.msra.mxu1 %v3551_v53  ;;  %1839 = vmatprep.subr.bf16.mxu0 %v3556_v54  ;;  %v3649_v53 = vld [vmem:[#allocation2 + $0x7ec] ss:$16 sps:$4 sm:$0xff]   ;;  %v3644_v54 = vld [vmem:[#allocation2 + $0x5e8] ss:$16 sps:$4 sm:$0xff]  }
  0xc0   :  { %1880 = vmatprep.subr.bf16.mxu1 %v3559_v55  ;;  %v3647_v55 = vld [vmem:[#allocation2 + $0x7e8] ss:$16 sps:$4 sm:$0xff]  }
  0xc2   :  { %1840 = vmatpush2.bf16.msra.mxu0 %v3554_v56  ;;  %v3652_v56 = vld [vmem:[#allocation2 + $0x5cc] ss:$16 sps:$4 sm:$0xff]  }
  0xc3   :  { %1881 = vmatpush2.bf16.msra.mxu1 %v3557_v57  ;;  %1841 = vmatprep.subr.bf16.mxu0 %v3562_v58  ;;  %v3655_v57 = vld [vmem:[#allocation2 + $0x7cc] ss:$16 sps:$4 sm:$0xff]   ;;  %v3650_v58 = vld [vmem:[#allocation2 + $0x5c8] ss:$16 sps:$4 sm:$0xff]  }
  0xc4   :  { %1882 = vmatprep.subr.bf16.mxu1 %v3565_v59  ;;  %v3653_v59 = vld [vmem:[#allocation2 + $0x7c8] ss:$16 sps:$4 sm:$0xff]  }
  0xc6   :  { %1842 = vmatpush2.bf16.msra.mxu0 %v3560_v60  ;;  %v3658_v60 = vld [vmem:[#allocation2 + $0x5ac] ss:$16 sps:$4 sm:$0xff]  }
  0xc7   :  { %1883 = vmatpush2.bf16.msra.mxu1 %v3563_v61  ;;  %1843 = vmatprep.subr.bf16.mxu0 %v3568_v62  ;;  %v3661_v61 = vld [vmem:[#allocation2 + $0x7ac] ss:$16 sps:$4 sm:$0xff]   ;;  %v3656_v62 = vld [vmem:[#allocation2 + $0x5a8] ss:$16 sps:$4 sm:$0xff]  }
  0xc8   :  { %1884 = vmatprep.subr.bf16.mxu1 %v3571_v63  ;;  %v3659_v63 = vld [vmem:[#allocation2 + $0x7a8] ss:$16 sps:$4 sm:$0xff]  }
  0xca   :  { %1844 = vmatpush2.bf16.msra.mxu0 %v3566_v0  ;;  %v3664_v0 = vld [vmem:[#allocation2 + $0x58c] ss:$16 sps:$4 sm:$0xff]  }
  0xcb   :  { %1885 = vmatpush2.bf16.msra.mxu1 %v3569_v1  ;;  %1845 = vmatprep.subr.bf16.mxu0 %v3574_v2  ;;  %v3667_v1 = vld [vmem:[#allocation2 + $0x78c] ss:$16 sps:$4 sm:$0xff]   ;;  %v3662_v2 = vld [vmem:[#allocation2 + $0x588] ss:$16 sps:$4 sm:$0xff]  }
  0xcc   :  { %1886 = vmatprep.subr.bf16.mxu1 %v3577_v3  ;;  %v3665_v3 = vld [vmem:[#allocation2 + $0x788] ss:$16 sps:$4 sm:$0xff]  }
  0xce   :  { %1846 = vmatpush2.bf16.msra.mxu0 %v3572_v4  ;;  %v3670_v4 = vld [vmem:[#allocation2 + $0x56c] ss:$16 sps:$4 sm:$0xff]  }
  0xcf   :  { %1887 = vmatpush2.bf16.msra.mxu1 %v3575_v5  ;;  %1847 = vmatprep.subr.bf16.mxu0 %v3580_v8  ;;  %v3673_v5 = vld [vmem:[#allocation2 + $0x76c] ss:$16 sps:$4 sm:$0xff]   ;;  %v3668_v8 = vld [vmem:[#allocation2 + $0x568] ss:$16 sps:$4 sm:$0xff]  }
  0xd0   :  { %1888 = vmatprep.subr.bf16.mxu1 %v3583_v9  ;;  %v3671_v9 = vld [vmem:[#allocation2 + $0x768] ss:$16 sps:$4 sm:$0xff]  }
  0xd2   :  { %1848 = vmatpush2.bf16.msra.mxu0 %v3578_v10  ;;  %v3676_v10 = vld [vmem:[#allocation2 + $0x54c] ss:$16 sps:$4 sm:$0xff]  }
  0xd3   :  { %1889 = vmatpush2.bf16.msra.mxu1 %v3581_v11  ;;  %1849 = vmatprep.subr.bf16.mxu0 %v3586_v12  ;;  %v3679_v11 = vld [vmem:[#allocation2 + $0x74c] ss:$16 sps:$4 sm:$0xff]   ;;  %v3674_v12 = vld [vmem:[#allocation2 + $0x548] ss:$16 sps:$4 sm:$0xff]  }
  0xd4   :  { %1890 = vmatprep.subr.bf16.mxu1 %v3589_v13  ;;  %v3677_v13 = vld [vmem:[#allocation2 + $0x748] ss:$16 sps:$4 sm:$0xff]  }
  0xd6   :  { %1850 = vmatpush2.bf16.msra.mxu0 %v3584_v14  ;;  %v3682_v14 = vld [vmem:[#allocation2 + $0x52c] ss:$16 sps:$4 sm:$0xff]  }
  0xd7   :  { %1891 = vmatpush2.bf16.msra.mxu1 %v3587_v15  ;;  %1851 = vmatprep.subr.bf16.mxu0 %v3592_v18  ;;  %v3685_v15 = vld [vmem:[#allocation2 + $0x72c] ss:$16 sps:$4 sm:$0xff]   ;;  %v3680_v18 = vld [vmem:[#allocation2 + $0x528] ss:$16 sps:$4 sm:$0xff]  }
  0xd8   :  { %1892 = vmatprep.subr.bf16.mxu1 %v3595_v19  ;;  %v3683_v19 = vld [vmem:[#allocation2 + $0x728] ss:$16 sps:$4 sm:$0xff]  }
  0xda   :  { %1852 = vmatpush2.bf16.msra.mxu0 %v3590_v20  ;;  %v3688_v20 = vld [vmem:[#allocation2 + $0x50c] ss:$16 sps:$4 sm:$0xff]  }
  0xdb   :  { %1893 = vmatpush2.bf16.msra.mxu1 %v3593_v21  ;;  %1903 = vmatprep.subr.bf16.mxu0 %v3598_v22  ;;  %v3691_v21 = vld [vmem:[#allocation2 + $0x70c] ss:$16 sps:$4 sm:$0xff]   ;;  %v3686_v22 = vld [vmem:[#allocation2 + $0x508] ss:$16 sps:$4 sm:$0xff]  }
  0xdc   :  { %1944 = vmatprep.subr.bf16.mxu1 %v3601_v23  ;;  %v3689_v23 = vld [vmem:[#allocation2 + $0x708] ss:$16 sps:$4 sm:$0xff]  }
  0xdd   :  { %1854 = vmatmul.mubr.bf16.vlgmr.msra.gmra.mxu0 %v3946_v6  ;;  %v3614_v6 = vld [vmem:[#allocation2 + $0x488] ss:$16 sps:$4 sm:$0xff]  }
  0xde   :  { %1895 = vmatmul.mubr.bf16.vlgmr.msra.gmra.mxu1 %v3948_v7  ;;  %1904 = vmatpush1.bf16.msra.mxu0 %v3596_v24  ;;  %v3617_v7 = vld [vmem:[#allocation2 + $0x688] ss:$16 sps:$4 sm:$0xff]   ;;  %v3694_v24 = vld [vmem:[#allocation4 + $0x74] ss:$8 sps:$4 sm:$0xff]  }
  0xdf   :  { %1945 = vmatpush1.bf16.msra.mxu1 %v3599_v25  ;;  %1905 = vmatprep.subr.bf16.mxu0 %v3604_v26  ;;  %v3692_v25 = vld [vmem:[#allocation4 + $0x70] ss:$8 sps:$4 sm:$0xff]   ;;  %v3697_v26 = vld [vmem:[#allocation4 + $0x64] ss:$8 sps:$4 sm:$0xff]  }
  0xe0   :  { %1946 = vmatprep.subr.bf16.mxu1 %v3607_v27  ;;  %1935 = vmatprep.mubr.bf16.mxu0 %v3964_v36  ;;  %v3631_v36 = vld [vmem:[#allocation2 + $0x64c] ss:$16 sps:$4 sm:$0xff]  }
  0xe1   :  { %1976 = vmatprep.mubr.bf16.mxu1 %v3968_v37  ;;  %v3626_v37 = vld [vmem:[#allocation2 + $0x448] ss:$16 sps:$4 sm:$0xff]  }
  0xe2   :  { %1906 = vmatpush1.bf16.msra.mxu0 %v3602_v28 }
  0xe3   :  { %1947 = vmatpush1.bf16.msra.mxu1 %v3605_v29  ;;  %1907 = vmatprep.subr.bf16.mxu0 %v3610_v30  ;;  %v3695_v29 = vld [vmem:[#allocation4 + $0x60] ss:$8 sps:$4 sm:$0xff]  }
  0xe4   :  { %1948 = vmatprep.subr.bf16.mxu1 %v3613_v31 }
  0xe6   :  { %1908 = vmatpush1.bf16.msra.mxu0 %v3608_v32  ;;  %v3700_v32 = vld [vmem:[#allocation4 + $0x54] ss:$8 sps:$4 sm:$0xff]  }
  0xe7   :  { %1949 = vmatpush1.bf16.msra.mxu1 %v3611_v33  ;;  %1909 = vmatprep.subr.bf16.mxu0 %v3616_v34 }
  0xe8   :  { %1950 = vmatprep.subr.bf16.mxu1 %v3619_v47  ;;  %v3698_v47 = vld [vmem:[#allocation4 + $0x50] ss:$8 sps:$4 sm:$0xff]  }
  0xea   :  { %1910 = vmatpush1.bf16.msra.mxu0 %v3614_v6 }
  0xeb   :  { %1951 = vmatpush1.bf16.msra.mxu1 %v3617_v7  ;;  %1911 = vmatprep.subr.bf16.mxu0 %v3622_v51  ;;  %v3703_v51 = vld [vmem:[#allocation4 + $0x44] ss:$8 sps:$4 sm:$0xff]  }
  0xec   :  { %1952 = vmatprep.subr.bf16.mxu1 %v3625_v35  ;;  %v3740_v35 = vld [vmem:[#allocation4 + $0x170] ss:$8 sps:$4 sm:$0xff]  }
  0xee   :  { %1912 = vmatpush1.bf16.msra.mxu0 %v3620_v38  ;;  %v3745_v38 = vld [vmem:[#allocation4 + $0x164] ss:$8 sps:$4 sm:$0xff]  }
  0xef   :  { %1953 = vmatpush1.bf16.msra.mxu1 %v3623_v39  ;;  %1913 = vmatprep.subr.bf16.mxu0 %v3628_v40  ;;  %v3743_v39 = vld [vmem:[#allocation4 + $0x160] ss:$8 sps:$4 sm:$0xff]   ;;  %v3706_v40 = vld [vmem:[#allocation4 + $0x34] ss:$8 sps:$4 sm:$0xff]  }
  0xf0   :  { %1954 = vmatprep.subr.bf16.mxu1 %v3631_v36  ;;  %v3748_v36 = vld [vmem:[#allocation4 + $0x154] ss:$8 sps:$4 sm:$0xff]  }
  0xf2   :  { %1914 = vmatpush1.bf16.msra.mxu0 %v3626_v37  ;;  %v3704_v37 = vld [vmem:[#allocation4 + $0x30] ss:$8 sps:$4 sm:$0xff]  }
  0xf3   :  { %1955 = vmatpush1.bf16.msra.mxu1 %v3629_v41  ;;  %1915 = vmatprep.subr.bf16.mxu0 %v3634_v42  ;;  %v3746_v41 = vld [vmem:[#allocation4 + $0x150] ss:$8 sps:$4 sm:$0xff]   ;;  %v3709_v42 = vld [vmem:[#allocation4 + $0x24] ss:$8 sps:$4 sm:$0xff]  }
  0xf4   :  { %1956 = vmatprep.subr.bf16.mxu1 %v3637_v43  ;;  %v3751_v43 = vld [vmem:[#allocation4 + $0x144] ss:$8 sps:$4 sm:$0xff]  }
  0xf6   :  { %1916 = vmatpush1.bf16.msra.mxu0 %v3632_v44  ;;  %v3707_v44 = vld [vmem:[#allocation4 + $0x20] ss:$8 sps:$4 sm:$0xff]  }
  0xf7   :  { %1957 = vmatpush1.bf16.msra.mxu1 %v3635_v45  ;;  %1917 = vmatprep.subr.bf16.mxu0 %v3640_v46  ;;  %v3749_v45 = vld [vmem:[#allocation4 + $0x140] ss:$8 sps:$4 sm:$0xff]   ;;  %v3712_v46 = vld [vmem:[#allocation4 + $0x14] ss:$8 sps:$4 sm:$0xff]  }
  0xf8   :  { %1958 = vmatprep.subr.bf16.mxu1 %v3643_v48  ;;  %v3754_v48 = vld [vmem:[#allocation4 + $0x134] ss:$8 sps:$4 sm:$0xff]  }
  0xfa   :  { %1918 = vmatpush1.bf16.msra.mxu0 %v3638_v49  ;;  %v3710_v49 = vld [vmem:[#allocation4 + $0x10] ss:$8 sps:$4 sm:$0xff]  }
  0xfb   :  { %1959 = vmatpush1.bf16.msra.mxu1 %v3641_v50  ;;  %1919 = vmatprep.subr.bf16.mxu0 %v3646_v52  ;;  %v3752_v50 = vld [vmem:[#allocation4 + $0x130] ss:$8 sps:$4 sm:$0xff]   ;;  %v3715_v52 = vld [vmem:[#allocation4 + $0x4] ss:$8 sps:$4 sm:$0xff]  }
  0xfc   :  { %1960 = vmatprep.subr.bf16.mxu1 %v3649_v53  ;;  %v3757_v53 = vld [vmem:[#allocation4 + $0x124] ss:$8 sps:$4 sm:$0xff]  }
  0xfe   :  { %1920 = vmatpush2.bf16.msra.mxu0 %v3644_v54  ;;  %v3713_v54 = vld [vmem:[#allocation4] ss:$8 sps:$4 sm:$0xff]  }
  0xff   :  { %1961 = vmatpush2.bf16.msra.mxu1 %v3647_v55  ;;  %1921 = vmatprep.subr.bf16.mxu0 %v3652_v56  ;;  %v3755_v55 = vld [vmem:[#allocation4 + $0x120] ss:$8 sps:$4 sm:$0xff]   ;;  %v3718_v56 = vld [vmem:[#allocation4 + $0xf4] ss:$8 sps:$4 sm:$0xff]  }
 0x100   :  { %1962 = vmatprep.subr.bf16.mxu1 %v3655_v57  ;;  %v3760_v57 = vld [vmem:[#allocation4 + $0x114] ss:$8 sps:$4 sm:$0xff]  }
 0x102   :  { %1922 = vmatpush2.bf16.msra.mxu0 %v3650_v58  ;;  %v3716_v58 = vld [vmem:[#allocation4 + $0xf0] ss:$8 sps:$4 sm:$0xff]  }
 0x103   :  { %1963 = vmatpush2.bf16.msra.mxu1 %v3653_v59  ;;  %1923 = vmatprep.subr.bf16.mxu0 %v3658_v60  ;;  %v3758_v59 = vld [vmem:[#allocation4 + $0x110] ss:$8 sps:$4 sm:$0xff]   ;;  %v3721_v60 = vld [vmem:[#allocation4 + $0xe4] ss:$8 sps:$4 sm:$0xff]  }
 0x104   :  { %1964 = vmatprep.subr.bf16.mxu1 %v3661_v61  ;;  %v3763_v61 = vld [vmem:[#allocation4 + $0x104] ss:$8 sps:$4 sm:$0xff]  }
 0x106   :  { %1924 = vmatpush2.bf16.msra.mxu0 %v3656_v62  ;;  %v3719_v62 = vld [vmem:[#allocation4 + $0xe0] ss:$8 sps:$4 sm:$0xff]  }
 0x107   :  { %1965 = vmatpush2.bf16.msra.mxu1 %v3659_v63  ;;  %1925 = vmatprep.subr.bf16.mxu0 %v3664_v0  ;;  %v3761_v63 = vld [vmem:[#allocation4 + $0x100] ss:$8 sps:$4 sm:$0xff]   ;;  %v3724_v0 = vld [vmem:[#allocation4 + $0xd4] ss:$8 sps:$4 sm:$0xff]  }
 0x108   :  { %1966 = vmatprep.subr.bf16.mxu1 %v3667_v1  ;;  %v3766_v1 = vld [vmem:[#allocation4 + $0x1f4] ss:$8 sps:$4 sm:$0xff]  }
 0x10a   :  { %1926 = vmatpush2.bf16.msra.mxu0 %v3662_v2  ;;  %v3722_v2 = vld [vmem:[#allocation4 + $0xd0] ss:$8 sps:$4 sm:$0xff]  }
 0x10b   :  { %1967 = vmatpush2.bf16.msra.mxu1 %v3665_v3  ;;  %1927 = vmatprep.subr.bf16.mxu0 %v3670_v4  ;;  %v3764_v3 = vld [vmem:[#allocation4 + $0x1f0] ss:$8 sps:$4 sm:$0xff]   ;;  %v3727_v4 = vld [vmem:[#allocation4 + $0xc4] ss:$8 sps:$4 sm:$0xff]  }
 0x10c   :  { %1968 = vmatprep.subr.bf16.mxu1 %v3673_v5  ;;  %v3769_v5 = vld [vmem:[#allocation4 + $0x1e4] ss:$8 sps:$4 sm:$0xff]  }
 0x10e   :  { %1928 = vmatpush2.bf16.msra.mxu0 %v3668_v8  ;;  %v3725_v8 = vld [vmem:[#allocation4 + $0xc0] ss:$8 sps:$4 sm:$0xff]  }
 0x10f   :  { %1969 = vmatpush2.bf16.msra.mxu1 %v3671_v9  ;;  %1929 = vmatprep.subr.bf16.mxu0 %v3676_v10  ;;  %v3767_v9 = vld [vmem:[#allocation4 + $0x1e0] ss:$8 sps:$4 sm:$0xff]   ;;  %v3730_v10 = vld [vmem:[#allocation4 + $0xb4] ss:$8 sps:$4 sm:$0xff]  }
 0x110   :  { %1970 = vmatprep.subr.bf16.mxu1 %v3679_v11  ;;  %v3772_v11 = vld [vmem:[#allocation4 + $0x1d4] ss:$8 sps:$4 sm:$0xff]  }
 0x112   :  { %1930 = vmatpush2.bf16.msra.mxu0 %v3674_v12  ;;  %v329_v12 = vlaneseq }
 0x113   :  { %1971 = vmatpush2.bf16.msra.mxu1 %v3677_v13  ;;  %1931 = vmatprep.subr.bf16.mxu0 %v3682_v14  ;;  %v3728_v13 = vld [vmem:[#allocation4 + $0xb0] ss:$8 sps:$4 sm:$0xff]  }
 0x114   :  { %1972 = vmatprep.subr.bf16.mxu1 %v3685_v15  ;;  %v3770_v14 = vld [vmem:[#allocation4 + $0x1d0] ss:$8 sps:$4 sm:$0xff]   ;;  %v3733_v15 = vld [vmem:[#allocation4 + $0xa4] ss:$8 sps:$4 sm:$0xff]  }
 0x116   :  { %1932 = vmatpush2.bf16.msra.mxu0 %v3680_v18  ;;  %v3775_v18 = vld [vmem:[#allocation4 + $0x1c4] ss:$8 sps:$4 sm:$0xff]  }
 0x117   :  { %1973 = vmatpush2.bf16.msra.mxu1 %v3683_v19  ;;  %1933 = vmatprep.subr.bf16.mxu0 %v3688_v20  ;;  %v3998_v19 = vshrl.u32 %v329_v12, 7  ;;  %v3731_v20 = vld [vmem:[#allocation4 + $0xa0] ss:$8 sps:$4 sm:$0xff]   ;;  %v3797_v12 = vld [vmem:[%s4143_s5 + $0x18] sm:$0xff]  }
 0x118   :  { %1974 = vmatprep.subr.bf16.mxu1 %v3691_v21  ;;  %v3773_v21 = vld [vmem:[#allocation4 + $0x1c0] ss:$8 sps:$4 sm:$0xff]  }
 0x11a   :  { %1934 = vmatpush2.bf16.msra.mxu0 %v3686_v22  ;;  %v3736_v22 = vld [vmem:[#allocation4 + $0x94] ss:$8 sps:$4 sm:$0xff]  }
 0x11b   :  { %1975 = vmatpush2.bf16.msra.mxu1 %v3689_v23  ;;  %2393 = vmatprep.subr.bf16.mxu0 %v3694_v24  ;;  %v3778_v23 = vld [vmem:[#allocation4 + $0x1b4] ss:$8 sps:$4 sm:$0xff]   ;;  %v331_v24 = vsub.s32 0, %v3998_v19 }
 0x11d   :  { %v3988_v27 = vpop.f32.mrf.mxu0  ;;  %1936 = vmatmul.mubr.bf16.vlgmr.msra.gmra.mxu0 %v3974_v16  ;;  %v3742_v16 = vld [vmem:[#allocation4 + $0x174] ss:$8 sps:$4 sm:$0xff]  }
 0x11e   :  { %v3990_v28 = vpop.f32.mrf.mxu1  ;;  %1977 = vmatmul.mubr.bf16.vlgmr.msra.gmra.mxu1 %v3978_v17  ;;  %2394 = vmatpush1.bf16.msra.mxu0 %v3692_v25  ;;  %v3701_v17 = vld [vmem:[#allocation4 + $0x40] ss:$8 sps:$4 sm:$0xff]  }
 0x11f   :  { %v3994_v30 = vpop.f32.mrf.mxu0  ;;  %2395 = vmatprep.subr.bf16.mxu0 %v3697_v26  ;;  %2434 = vmatprep.subr.bf16.mxu1 %v3742_v16  ;;  %v4004_v25 = vld [vmem:[%s4140_s2] sm:$0xf]  ;;  %v335_v26 = vsub.s32 1, %v3998_v19 }
 0x120   :  { %v3996_v31 = vpop.f32.mrf.mxu1  ;;  %2435 = vmatpush1.bf16.msra.mxu1 %v3740_v35 }
 0x121   :  { %v1695_v33 = vpop.f32.mrf.mxu0  ;;  %2436 = vmatprep.subr.bf16.mxu1 %v3745_v38 }
 0x122   :  { %v1736_v34 = vpop.f32.mrf.mxu1  ;;  %2396 = vmatpush1.bf16.msra.mxu0 %v3695_v29  ;;  %v3734_v29 = vld [vmem:[#allocation4 + $0x90] ss:$8 sps:$4 sm:$0xff]   ;;  %v3739_v33 = vld [vmem:[#allocation4 + $0x84] ss:$8 sps:$4 sm:$0xff]  }
 0x123   :  { %v1696_v6 = vpop.f32.mrf.mxu0  ;;  %2397 = vmatprep.subr.bf16.mxu0 %v3700_v32  ;;  %v3776_v32 = vld [vmem:[#allocation4 + $0x1b0] ss:$8 sps:$4 sm:$0xff]   ;;  %v332_v34 = vrot.slane %v4004_v25, %v331_v24 }
 0x124   :  { %v1737_v7 = vpop.f32.mrf.mxu1  ;;  %2437 = vmatpush1.bf16.msra.mxu1 %v3743_v39  ;;  %v3737_v6 = vld [vmem:[#allocation4 + $0x80] ss:$8 sps:$4 sm:$0xff]  }
 0x125   :  { %2438 = vmatprep.subr.bf16.mxu1 %v3748_v36  ;;  %v1692_v7 = vadd.f32 %v3988_v27, %v332_v34  ;;  %v3779_v36 = vld [vmem:[#allocation4 + $0x1a0] ss:$8 sps:$4 sm:$0xff]  }
 0x126   :  { %2398 = vmatpush1.bf16.msra.mxu0 %v3698_v47  ;;  %v336_v47 = vrot.slane %v4004_v25, %v335_v26 }
 0x127   :  { %2399 = vmatprep.subr.bf16.mxu0 %v3703_v51  ;;  %v1733_v35 = vadd.f32 %v3990_v28, %v1692_v7 }
 0x128   :  { %2439 = vmatpush1.bf16.msra.mxu1 %v3746_v41  ;;  %v1694_v51 = vadd.f32 %v3994_v30, %v336_v47 }
 0x129   :  { %2440 = vmatprep.subr.bf16.mxu1 %v3751_v43 }
 0x12a   :  { %2400 = vmatpush1.bf16.msra.mxu0 %v3701_v17  ;;  %v3781_v17 = vld [vmem:[#allocation4 + $0x1a4] ss:$8 sps:$4 sm:$0xff]   ;;  %v1735_v39 = vadd.f32 %v3996_v31, %v1694_v51 }
 0x12b   :  { %2401 = vmatprep.subr.bf16.mxu0 %v3706_v40 }
 0x12c   :  { %2441 = vmatpush1.bf16.msra.mxu1 %v3749_v45  ;;  %v3784_v45 = vld [vmem:[#allocation4 + $0x194] ss:$8 sps:$4 sm:$0xff]  }
 0x12d   :  { %2442 = vmatprep.subr.bf16.mxu1 %v3754_v48  ;;  %v3782_v48 = vld [vmem:[#allocation4 + $0x190] ss:$8 sps:$4 sm:$0xff]  }
 0x12e   :  { %2402 = vmatpush1.bf16.msra.mxu0 %v3704_v37 }
 0x12f   :  { %2403 = vmatprep.subr.bf16.mxu0 %v3709_v42 }
 0x130   :  { %2443 = vmatpush1.bf16.msra.mxu1 %v3752_v50 }
 0x131   :  { %2444 = vmatprep.subr.bf16.mxu1 %v3757_v53 }
 0x132   :  { %2404 = vmatpush1.bf16.msra.mxu0 %v3707_v44 }
 0x133   :  { %2405 = vmatprep.subr.bf16.mxu0 %v3712_v46 }
 0x134   :  { %2445 = vmatpush1.bf16.msra.mxu1 %v3755_v55 }
 0x135   :  { %2446 = vmatprep.subr.bf16.mxu1 %v3760_v57 }
 0x136   :  { %2406 = vmatpush1.bf16.msra.mxu0 %v3710_v49 }
 0x137   :  { %2407 = vmatprep.subr.bf16.mxu0 %v3715_v52  ;;  %v3787_v52 = vld [vmem:[#allocation4 + $0x184] ss:$8 sps:$4 sm:$0xff]  }
 0x138   :  { %2447 = vmatpush1.bf16.msra.mxu1 %v3758_v59 }
 0x139   :  { %2448 = vmatprep.subr.bf16.mxu1 %v3763_v61 }
 0x13a   :  { %2408 = vmatpush1.bf16.msra.mxu0 %v3713_v54  ;;  %v3785_v54 = vld [vmem:[#allocation4 + $0x180] ss:$8 sps:$4 sm:$0xff]  }
 0x13b   :  { %2409 = vmatprep.subr.bf16.mxu0 %v3718_v56 }
 0x13c   :  { %2449 = vmatpush1.bf16.msra.mxu1 %v3761_v63 }
 0x13d   :  { %2450 = vmatprep.subr.bf16.mxu1 %v3766_v1  ;;  %v3788_v1 = vld [vmem:[%s4143_s5 + $0x78] sm:$0xff]  }
 0x13e   :  { %2410 = vmatpush2.bf16.msra.mxu0 %v3716_v58 }
 0x13f   :  { %2411 = vmatprep.subr.bf16.mxu0 %v3721_v60 }
 0x140   :  { %2451 = vmatpush2.bf16.msra.mxu1 %v3764_v3  ;;  %v3790_v3 = vld [vmem:[%s4143_s5 + $0x70] sm:$0xff]  }
 0x141   :  { %2452 = vmatprep.subr.bf16.mxu1 %v3769_v5  ;;  %v3792_v5 = vld [vmem:[%s4143_s5 + $0x68] sm:$0xff]  }
 0x142   :  { %2412 = vmatpush2.bf16.msra.mxu0 %v3719_v62 }
 0x143   :  { %2413 = vmatprep.subr.bf16.mxu0 %v3724_v0 }
 0x144   :  { %2453 = vmatpush2.bf16.msra.mxu1 %v3767_v9  ;;  %v3794_v9 = vld [vmem:[%s4143_s5 + $0x60] sm:$0xff]  }
 0x145   :  { %2454 = vmatprep.subr.bf16.mxu1 %v3772_v11  ;;  %v3796_v11 = vld [vmem:[%s4143_s5 + $0x58] sm:$0xff]  }
 0x146   :  { %2414 = vmatpush2.bf16.msra.mxu0 %v3722_v2  ;;  %v3789_v2 = vld [vmem:[%s4143_s5 + $0x38] sm:$0xff]  }
 0x147   :  { %2415 = vmatprep.subr.bf16.mxu0 %v3727_v4  ;;  %v3791_v4 = vld [vmem:[%s4143_s5 + $0x30] sm:$0xff]  }
 0x148   :  { %2455 = vmatpush2.bf16.msra.mxu1 %v3770_v14  ;;  %v343_v14 = vsub.s32 3, %v3998_v19 }
 0x149   :  { %2456 = vmatprep.subr.bf16.mxu1 %v3775_v18 }
 0x14a   :  { %2416 = vmatpush2.bf16.msra.mxu0 %v3725_v8  ;;  %v3793_v8 = vld [vmem:[%s4143_s5 + $0x28] sm:$0xff]   ;;  %v344_v18 = vrot.slane %v4004_v25, %v343_v14  ;;  %v3192_v14 = vld [vmem:[%s4144_s6] ss:$0 sm:$0xff] }
 0x14b   :  { %2417 = vmatprep.subr.bf16.mxu0 %v3730_v10  ;;  %v3795_v10 = vld [vmem:[%s4143_s5 + $0x20] sm:$0xff]  }
 0x14c   :  { %2457 = vmatpush2.bf16.msra.mxu1 %v3773_v21 }
 0x14d   :  { %2458 = vmatprep.subr.bf16.mxu1 %v3778_v23 }
 0x14e   :  { %2418 = vmatpush2.bf16.msra.mxu0 %v3728_v13  ;;  %v339_v13 = vsub.s32 2, %v3998_v19  ;;  %v3809_v19 = vld [vmem:[%s4145_s7 + $0x10] sm:$0xff]  }
 0x14f   :  { %2419 = vmatprep.subr.bf16.mxu0 %v3733_v15 }
 0x150   :  { %2459 = vmatpush2.bf16.msra.mxu1 %v3776_v32  ;;  %v340_v15 = vrot.slane %v4004_v25, %v339_v13 }
 0x151   :  { %2460 = vmatprep.subr.bf16.mxu1 %v3781_v17 }
 0x152   :  { %2420 = vmatpush2.bf16.msra.mxu0 %v3731_v20 }
 0x153   :  { %2421 = vmatprep.subr.bf16.mxu0 %v3736_v22 }
 0x154   :  { %2461 = vmatpush2.bf16.msra.mxu1 %v3779_v36 }
 0x155   :  { %2462 = vmatprep.subr.bf16.mxu1 %v3784_v45  ;;  %v3800_v45 = vld [vmem:[%s4143_s5 + $0x48] sm:$0xff]  }
 0x156   :  { %2422 = vmatpush2.bf16.msra.mxu0 %v3734_v29 }
 0x157   :  { %2423 = vmatprep.subr.bf16.mxu0 %v3739_v33 }
 0x158   :  { %2463 = vmatpush2.bf16.msra.mxu1 %v3782_v48 }
 0x159   :  { %2464 = vmatprep.subr.bf16.mxu1 %v3787_v52  ;;  %v3805_v52 = vld [vmem:[%s4145_s7 + $0x30] sm:$0xff]  }
 0x15a   :  { %2424 = vmatpush2.bf16.msra.mxu0 %v3737_v6 }
 0x15b   :  { %3224 = vmatprep.subr.bf16.mxu0 %v3788_v1 }
 0x15c   :  { %2465 = vmatpush2.bf16.msra.mxu1 %v3785_v54  ;;  %v3807_v54 = vld [vmem:[%s4145_s7 + $0x20] sm:$0xff]  }
 0x15d   :  { %v1773_v16 = vpop.f32.mrf.mxu0 }
 0x15e   :  { %v1814_v38 = vpop.f32.mrf.mxu1  ;;  %v1774_v40 = vadd.f32 %v1773_v16, %v1733_v35 }
 0x15f   :  { %v1775_v37 = vpop.f32.mrf.mxu0 }
 0x160   :  { %v1816_v41 = vpop.f32.mrf.mxu1  ;;  %v1815_v42 = vadd.f32 %v1814_v38, %v1774_v40  ;;  %v1776_v43 = vadd.f32 %v1775_v37, %v1735_v39 }
 0x161   :  { %v1777_v44 = vpop.f32.mrf.mxu0 }
 0x162   :  { %v1818_v27 = vpop.f32.mrf.mxu1  ;;  %v1985_v30 = vmul.f32 0.1, %v1815_v42  ;;  %v1817_v46 = vadd.f32 %v1816_v41, %v1776_v43  ;;  %v3799_v43 = vld [vmem:[%s4143_s5 + $0x10] sm:$0xff]  }
 0x163   :  { %v1778_v28 = vpop.f32.mrf.mxu0 }
 0x164   :  { %v1819_v49 = vpop.f32.mrf.mxu1  ;;  %v1986_v50 = vmul.f32 0.1, %v1817_v46  ;;  %v1989_v31 = vmax.f32 %v1815_v42, %v1985_v30  ;;  %v3798_v42 = vld [vmem:[%s4143_s5 + $0x50] sm:$0xff]   ;;  %v3801_v30 = vld [vmem:[%s4143_s5 + $0x8] sm:$0xff]   ;;  %v3802_v28 = vld [vmem:[%s4143_s5 + $0x40] sm:$0xff]  }
 0x165   :  { %v3803_v49 = vld [vmem:[%s4143_s5] sm:$0xff]  }
 0x166   :  { %v1990_v53 = vmax.f32 %v1817_v46, %v1986_v50  ;;  %v1993_v56 = vpack.c.bf16 %v1989_v31, %v1989_v31  ;;  %v3804_v50 = vld [vmem:[%s4145_s7 + $0x38] sm:$0xff]   ;;  %v3866_v31 = vmov 0.0  }
 0x167   :  { %3260 = vmatprep.subr.bf16.mxu1 %v3866_v31 }
 0x168   :  { %v1994_v55 = vpack.c.bf16 %v1990_v53, %v1990_v53  ;;  %v3806_v53 = vld [vmem:[%s4145_s7 + $0x28] sm:$0xff]  }
 0x16a   :  { %2425 = vmatprep.mubr.bf16.mxu0 %v1994_v55  ;;  %v3808_v55 = vld [vmem:[%s4145_s7 + $0x18] sm:$0xff]  }
 0x16b   :  { %2426 = vmatmul.mubr.bf16.vlgmr.msra.gmra.mxu0 %v1993_v56  ;;  %v2061_v56 = vld [vmem:[%s4142_s4] sm:$0x3] }
 0x16c   :  { %3225 = vmatpush3.bf16.msra.mxu0 %v3789_v2 }
 0x16d   :  { %3226 = vmatprep.subr.bf16.mxu0 %v3790_v3 }
 0x170   :  { %3227 = vmatpush3.bf16.msra.mxu0 %v3791_v4 }
 0x171   :  { %3228 = vmatprep.subr.bf16.mxu0 %v3792_v5 }
 0x174   :  { %3229 = vmatpush3.bf16.msra.mxu0 %v3793_v8 }
 0x175   :  { %3230 = vmatprep.subr.bf16.mxu0 %v3794_v9 }
 0x178   :  { %3231 = vmatpush3.bf16.msra.mxu0 %v3795_v10 }
 0x179   :  { %3232 = vmatprep.subr.bf16.mxu0 %v3796_v11  ;;  %v3812_v11 = vld [vmem:[%s4147_s9 + $0x18] sm:$0xff]  }
 0x17c   :  { %3233 = vmatpush3.bf16.msra.mxu0 %v3797_v12  ;;  %v3813_v12 = vld [vmem:[%s4147_s9 + $0x10] sm:$0xff]  }
 0x17d   :  { %3234 = vmatprep.subr.bf16.mxu0 %v3798_v42 }
 0x180   :  { %3235 = vmatpush3.bf16.msra.mxu0 %v3799_v43 }
 0x181   :  { %3236 = vmatprep.subr.bf16.mxu0 %v3800_v45 }
 0x184   :  { %3237 = vmatpush3.bf16.msra.mxu0 %v3801_v30 }
 0x185   :  { %3238 = vmatprep.subr.bf16.mxu0 %v3802_v28 }
 0x188   :  { %3239 = vmatpush3.bf16.msra.mxu0 %v3803_v49 }
 0x189   :  { %3280 = vmatprep.subr.bf16.mxu0 %v3866_v31 }
 0x19d   :  { %v1855_v57 = vpop.f32.mrf.mxu0 }
 0x19e   :  { %v1896_v58 = vpop.f32.mrf.mxu1  ;;  %v1856_v20 = vadd.f32 %v1855_v57, %v340_v15  ;;  %v2066_v57 = vrot.slane %v2061_v56, %v331_v24  ;;  %v3810_v24 = vld [vmem:[%s4145_s7 + $0x8] sm:$0xff]  }
 0x19f   :  { %v1857_v59 = vpop.f32.mrf.mxu0 }
 0x1a0   :  { %v1898_v60 = vpop.f32.mrf.mxu1  ;;  %v1858_v21 = vadd.f32 %v1857_v59, %v344_v18  ;;  %v1897_v22 = vadd.f32 %v1896_v58, %v1856_v20  ;;  %v2070_v58 = vrot.slane %v2061_v56, %v335_v26  ;;  %v3811_v26 = vld [vmem:[%s4145_s7] sm:$0xff]  }
 0x1a1   :  { %v1859_v61 = vpop.f32.mrf.mxu0 }
 0x1a2   :  { %v1900_v62 = vpop.f32.mrf.mxu1  ;;  %v1899_v32 = vadd.f32 %v1898_v60, %v1858_v21 }
 0x1a3   :  { %v1860_v63 = vpop.f32.mrf.mxu0 }
 0x1a4   :  { %v1901_v0 = vpop.f32.mrf.mxu1 }
 0x1dd   :  { %v1937_v23 = vpop.f32.mrf.mxu0 }
 0x1de   :  { %v1978_v29 = vpop.f32.mrf.mxu1  ;;  %v1938_v33 = vadd.f32 %v1937_v23, %v1897_v22 }
 0x1df   :  { %v1939_v34 = vpop.f32.mrf.mxu0 }
 0x1e0   :  { %v1980_v47 = vpop.f32.mrf.mxu1  ;;  %v1979_v6 = vadd.f32 %v1978_v29, %v1938_v33  ;;  %v1940_v7 = vadd.f32 %v1939_v34, %v1899_v32  ;;  %v3814_v33 = vld [vmem:[%s4147_s9 + $0x8] sm:$0xff]   ;;  %v3815_v34 = vld [vmem:[%s4147_s9] sm:$0xff]  }
 0x1e1   :  { %v1941_v51 = vpop.f32.mrf.mxu0 }
 0x1e2   :  { %v1982_v35 = vpop.f32.mrf.mxu1  ;;  %v1987_v16 = vmul.f32 0.1, %v1979_v6  ;;  %v1981_v38 = vadd.f32 %v1980_v47, %v1940_v7  ;;  %v3209_v47 = vld [vmem:[%s4146_s8] ss:$0 sm:$0xff] }
 0x1e3   :  { %v1942_v17 = vpop.f32.mrf.mxu0 }
 0x1e4   :  { %v1983_v39 = vpop.f32.mrf.mxu1  ;;  %v1988_v40 = vmul.f32 0.1, %v1981_v38  ;;  %v1991_v36 = vmax.f32 %v1979_v6, %v1987_v16 }
 0x1e6   :  { %v1992_v25 = vmax.f32 %v1981_v38, %v1988_v40  ;;  %v1995_v41 = vpack.c.bf16 %v1991_v36, %v1991_v36  ;;  %v3218_v40 = vld [vmem:[%s4148_s10] ss:$0 sm:$0xff] }
 0x1e8   :  { %v1996_v37 = vpack.c.bf16 %v1992_v25, %v1992_v25 }
 0x1ea   :  { %2466 = vmatprep.mubr.bf16.mxu1 %v1996_v37 }
 0x1eb   :  { %2467 = vmatmul.mubr.bf16.vlgmr.msra.gmra.mxu1 %v1995_v41 }
 0x1ec   :  { %3261 = vmatpush3.bf16.msra.mxu1 %v3804_v50  ;;  %3276 = vmatprep.mubr.msk.bf16.mxu1 %vm3867_vm0, %v3866_v31 }
 0x1ed   :  { %3262 = vmatprep.subr.bf16.mxu1 %v3866_v31 }
 0x1f0   :  { %3263 = vmatpush3.bf16.msra.mxu1 %v3805_v52 }
 0x1f1   :  { %3264 = vmatprep.subr.bf16.mxu1 %v3866_v31 }
 0x1f4   :  { %3265 = vmatpush3.bf16.msra.mxu1 %v3806_v53 }
 0x1f5   :  { %3266 = vmatprep.subr.bf16.mxu1 %v3866_v31 }
 0x1f8   :  { %3267 = vmatpush3.bf16.msra.mxu1 %v3807_v54 }
 0x1f9   :  { %3268 = vmatprep.subr.bf16.mxu1 %v3866_v31 }
 0x1fc   :  { %3269 = vmatpush3.bf16.msra.mxu1 %v3808_v55 }
 0x1fd   :  { %3270 = vmatprep.subr.bf16.mxu1 %v3866_v31 }
 0x200   :  { %3271 = vmatpush3.bf16.msra.mxu1 %v3809_v19 }
 0x201   :  { %3272 = vmatprep.subr.bf16.mxu1 %v3866_v31 }
 0x204   :  { %3273 = vmatpush3.bf16.msra.mxu1 %v3810_v24 }
 0x205   :  { %3274 = vmatprep.subr.bf16.mxu1 %v3866_v31 }
 0x208   :  { %3275 = vmatpush3.bf16.msra.mxu1 %v3811_v26 }
 0x22b   :  { %v2427_v44 = vpop.f32.mrf.mxu0 }
 0x22c   :  { %v2428_v59 = vadd.f32 %v2427_v44, %v2066_v57 }
 0x22d   :  { %v2429_v27 = vpop.f32.mrf.mxu0 }
 0x22e   :  { %v2430_v61 = vadd.f32 %v2429_v27, %v2070_v58 }
 0x22f   :  { %v2431_v46 = vpop.f32.mrf.mxu0 }
 0x231   :  { %v2432_v48 = vpop.f32.mrf.mxu0 }
 0x2ab   :  { %v2468_v60 = vpop.f32.mrf.mxu1 }
 0x2ac   :  { %v2469_v62 = vadd.f32 %v2468_v60, %v2428_v59 }
 0x2ad   :  { %v2470_v63 = vpop.f32.mrf.mxu1 }
 0x2ae   :  { %v2475_v0 = vmul.f32 0.1, %v2469_v62  ;;  %v2471_v1 = vadd.f32 %v2470_v63, %v2430_v61 }
 0x2af   :  { %v2472_v2 = vpop.f32.mrf.mxu1 }
 0x2b0   :  { %v2476_v3 = vmul.f32 0.1, %v2471_v1  ;;  %v2477_v4 = vmax.f32 %v2469_v62, %v2475_v0 }
 0x2b1   :  { %v2473_v5 = vpop.f32.mrf.mxu1 }
 0x2b2   :  { %v2478_v8 = vmax.f32 %v2471_v1, %v2476_v3  ;;  %v2479_v10 = vpack.c.bf16 %v2477_v4, %v2477_v4 }
 0x2b4   :  { %v2480_v9 = vpack.c.bf16 %v2478_v8, %v2478_v8 }
 0x2b6   :  { %2648 = vmatprep.mubr.bf16.mxu0 %v2480_v9 }
 0x2b7   :  { %2649 = vmatmul.mubr.bf16.vlgmr.msra.gmra.mxu0 %v2479_v10 }
 0x2b8   :  { %3288 = vmatprep.mubr.msk.bf16.mxu0 %vm3867_vm0, %v3866_v31  ;;  %3281 = vmatpush3.bf16.msra.mxu0 %v3812_v11 }
 0x2b9   :  { %3282 = vmatprep.subr.bf16.mxu0 %v3866_v31 }
 0x2bc   :  { %3283 = vmatpush3.bf16.msra.mxu0 %v3813_v12 }
 0x2bd   :  { %3284 = vmatprep.subr.bf16.mxu0 %v3866_v31 }
 0x2c0   :  { %3285 = vmatpush3.bf16.msra.mxu0 %v3814_v33 }
 0x2c1   :  { %3286 = vmatprep.subr.bf16.mxu0 %v3866_v31 }
 0x2c4   :  { %3287 = vmatpush3.bf16.msra.mxu0 %v3815_v34 }
 0x377   :  { %v3240_v13 = vpop.f32.mrf.mxu0 }
 0x379   :  { %v3241_v15 = vpop.f32.mrf.mxu0 }
 0x37a   :  { %v3242_v18 = vadd.f32 %v3241_v15, %v3240_v13 }
 0x37b   :  { %v3243_v20 = vpop.f32.mrf.mxu0 }
 0x37c   :  { %v2651_v21 = vadd.f32 %v3242_v18, %v3192_v14 }
 0x37d   :  { %v3244_v22 = vpop.f32.mrf.mxu0 }
 0x37e   :  { %v2656_v23 = vmul.f32 0.1, %v2651_v21 }
 0x380   :  { %v2657_v29 = vmax.f32 %v2651_v21, %v2656_v23 }
 0x382   :  { %v2658_v32 = vpack.c.bf16 %v2657_v29, %v2657_v29 }
 0x384   :  { %3277 = vmatmul.mubr.bf16.vlgmr.msra.gmra.mxu1 %v2658_v32 }
 0x444   :  { %v2764_v6 = vpop.f32.mrf.mxu1 }
 0x445   :  { %v2765_v7 = vadd.f32 %v3209_v47, %v2764_v6 }
 0x446   :  { %v3278_v51 = vpop.f32.mrf.mxu1 }
 0x447   :  { %v2770_v35 = vmul.f32 0.1, %v2765_v7 }
 0x448   :  { %v2767_v16 = vpop.f32.mrf.mxu1 }
 0x449   :  { %v2771_v38 = vmax.f32 %v2765_v7, %v2770_v35 }
 0x44a   :  { %v3279_v17 = vpop.f32.mrf.mxu1 }
 0x44b   :  { %v2772_v39 = vpack.c.bf16 %v2771_v38, %v2771_v38 }
 0x44d   :  { %3289 = vmatmul.mubr.msk.bf16.vlgmr.msra.gmra.mxu0 %vm2812_vm1, %v2772_v39 }
 0x50d   :  { %v2850_v36 = vpop.f32.mrf.mxu0 }
 0x50e   :  { %v2851_v25 = vadd.f32 %v3218_v40, %v2850_v36 }
 0x50f   :  { %v3290_v37 = vpop.f32.mrf.mxu0 }
 0x510   :  { %2857 = vst.msk [vmem:[%s4149_s11] sm:$0xff] %vm2856_vm2, %v2851_v25 }
 0x511   :  { %v2853_v41 = vpop.f32.mrf.mxu0 }
 0x513   :  { %v3291_v42 = vpop.f32.mrf.mxu0 }
 0x514   :  { %2862 = vsyncpa [#allocation3], 1 }
 0x515   :  { %2863 = vsyncpa [#allocation5], 1 }

</bundles_post_ra>
